<compile_context>
chip_gen: v5e
topology: v5e:2x2
jax: 0.10.0
libtpu: 0.0.40
codegen_flags: <defaults>
</compile_context>

<pallas_src>
import functools

import jax
import jax.numpy as jnp
from jax.experimental import pallas as pl
from jax.experimental.pallas import tpu as pltpu

# ----------------------------- model dims -----------------------------------
PATCH = 8      # patch-embed conv kernel == stride
HIDDEN = 128   # patch-embed output channels
EMBED = 128    # contrastive feature dim


# --------------------------- fused Pallas kernel ------------------------------
def _cavp_encode_kernel(x_ref, w1_ref, b1_ref, w2_ref, b2_ref, o_ref, acc_ref,
                        *, inv_patches):
    """Fused patch-embed + ReLU + mean-pool + projection + L2-normalize.

    grid = (frame_blocks, patch_blocks).  The patch axis is a reduction:
    per-frame sums live in the VMEM scratch `acc_ref` (init on the first patch
    block), and the projection / normalization epilogue runs on the last one.
    """
    p = pl.program_id(1)

    @pl.when(p == 0)
    def _init():
        acc_ref[...] = jnp.zeros_like(acc_ref)

    ft, pt, k = x_ref.shape
    x = x_ref[...].reshape(ft * pt, k)                               # bf16 rows
    h = jnp.dot(x, w1_ref[...], preferred_element_type=jnp.float32)  # MXU
    h = jnp.maximum(h + b1_ref[...], 0.0)                            # f32 bias+ReLU
    acc_ref[...] += h.reshape(ft, pt, HIDDEN).sum(axis=1)            # per-frame sum

    @pl.when(p == pl.num_programs(1) - 1)
    def _finalize():
        pooled = acc_ref[...] * inv_patches                          # spatial mean
        proj = jnp.dot(pooled.astype(jnp.bfloat16), w2_ref[...],
                       preferred_element_type=jnp.float32) + b2_ref[...]
        inv = jax.lax.rsqrt(
            jnp.sum(proj * proj, axis=-1, keepdims=True) + 1e-12)
        o_ref[...] = proj * inv                                      # L2 normalize


# ------------------------------ tile selection --------------------------------
def _round_up(x, m):
    return (x + m - 1) // m * m


def _default_patch_tile(num_patches, target=512):
    """Largest multiple-of-8 divisor of num_patches that is <= target.

    Falls back to the full extent when num_patches is not a multiple of 8
    (a full-extent block dim is always legal, at worst an in-kernel copy)."""
    if num_patches <= target or num_patches % 8:
        return num_patches
    best = 8
    for d in range(8, target + 1, 8):
        if num_patches % d == 0:
            best = d
    return best


def _default_frame_tile(n_frames, patch_tile, k,
                        target_bytes=4 * 1024 * 1024, num_cores=2):
    """Frames per block.

    ~4 MiB of bf16 patch rows per input buffer (8 MiB double-buffered: well
    inside v7x's 32 MiB scoped VMEM, and large enough to amortize the
    ~0.35 us/step pipeline overhead on v5e/v6e), capped so the "parallel"
    frame axis yields at least `num_cores` blocks (both v7x TensorCores)."""
    rows = max(8, target_bytes // (k * 2))
    ft = max(8, (rows // max(patch_tile, 1)) // 8 * 8)
    core_cap = max(8, _round_up(pl.cdiv(n_frames, num_cores), 8))
    return min(ft, core_cap)


# ----------------------------- pallas_call wrapper -----------------------------
def _encode_chunk(x, w1, b1, w2, b2, *, frame_tile, patch_tile, num_patches):
    """One pallas_call over a frame range whose length is divisible by frame_tile."""
    n, _, k = x.shape
    grid = (n // frame_tile, num_patches // patch_tile)
    kernel = functools.partial(_cavp_encode_kernel,
                               inv_patches=1.0 / num_patches)
    return pl.pallas_call(
        kernel,
        out_shape=jax.ShapeDtypeStruct((n, EMBED), jnp.float32),
        grid_spec=pltpu.PrefetchScalarGridSpec(
            num_scalar_prefetch=0,
            grid=grid,
            in_specs=[
                # last block dim == full array extent (192): legal, no K pad
                pl.BlockSpec((frame_tile, patch_tile, k),
                             lambda f, p: (f, p, 0)),
                pl.BlockSpec((k, HIDDEN), lambda f, p: (0, 0)),
                pl.BlockSpec((1, HIDDEN), lambda f, p: (0, 0)),
                pl.BlockSpec((HIDDEN, EMBED), lambda f, p: (0, 0)),
                pl.BlockSpec((1, EMBED), lambda f, p: (0, 0)),
            ],
            out_specs=pl.BlockSpec((frame_tile, EMBED), lambda f, p: (f, 0)),
            scratch_shapes=[pltpu.VMEM((frame_tile, HIDDEN), jnp.float32)],
        ),
        compiler_params=pltpu.CompilerParams(
            dimension_semantics=("parallel", "arbitrary"),
            vmem_limit_bytes=32 * 1024 * 1024),
    )(x, w1, b1, w2, b2)


# ------------------------- encode_video (stage1) ------------------------------
@functools.partial(jax.jit, static_argnames=("frame_tile", "patch_tile"))
def encode_video(frames, w_patch, b_patch, w_proj, b_proj,
                 *, frame_tile=None, patch_tile=None):
    """frames: (N, C, H, W) f32 -> (N, EMBED) L2-normalized per-frame features.

    Stand-in for stage1_model.encode_video(..., normalize=True, pool=False):
    one contrastive feature vector per frame."""
    n, c, h, w = frames.shape
    ph, pw = h // PATCH, w // PATCH
    num_patches = ph * pw
    k = c * PATCH * PATCH

    # im2col in XLA: cast to bf16 FIRST so every materialized intermediate of
    # the transpose chain is half-width; no K pad, no frame pad.
    # TODO(synk): pull patch extraction into the kernel (NHWC slab DMA +
    # in-VMEM regroup) to remove this HBM round-trip entirely.
    x = frames.astype(jnp.bfloat16).transpose(0, 2, 3, 1)
    x = x.reshape(n, ph, PATCH, pw, PATCH, c).transpose(0, 1, 3, 2, 4, 5)
    x = x.reshape(n, num_patches, k)

    w1 = w_patch.astype(jnp.bfloat16)
    w2 = w_proj.astype(jnp.bfloat16)

    if patch_tile is None:
        patch_tile = _default_patch_tile(num_patches)
    assert num_patches % patch_tile == 0
    if frame_tile is None:
        frame_tile = _default_frame_tile(n, patch_tile, k)
    frame_tile = min(frame_tile, n)
    assert frame_tile == n or frame_tile % 8 == 0

    enc = functools.partial(_encode_chunk, w1=w1, b1=b_patch, w2=w2, b2=b_proj,
                            patch_tile=patch_tile, num_patches=num_patches)

    # No frame-axis padding: divisible prefix in one grid, remainder (if any)
    # in a second single-block call with full-extent block shapes.
    n_full = (n // frame_tile) * frame_tile
    outs = [enc(x[:n_full], frame_tile=frame_tile)]
    if n_full < n:
        outs.append(enc(x[n_full:], frame_tile=n - n_full))
    return outs[0] if len(outs) == 1 else jnp.concatenate(outs, axis=0)


def encode_video_reference(frames, params):
    """Pure-JAX f32 reference for correctness checking."""
    n, c, h, w = frames.shape
    ph, pw = h // PATCH, w // PATCH
    x = frames.transpose(0, 2, 3, 1)
    x = x.reshape(n, ph, PATCH, pw, PATCH, c).transpose(0, 1, 3, 2, 4, 5)
    x = x.reshape(n, ph * pw, c * PATCH * PATCH)
    hdn = jnp.maximum(
        jnp.einsum("npk,kh->nph", x, params["w_patch"]) + params["b_patch"],
        0.0)
    pooled = hdn.mean(axis=1)
    proj = pooled @ params["w_proj"] + params["b_proj"]
    return proj / jnp.linalg.norm(proj, axis=-1, keepdims=True)


# ------------------------- module-level forward --------------------------------
def init_params(key):
    k1, k2, k3, k4 = jax.random.split(key, 4)
    patch_dim = 3 * PATCH * PATCH
    return {
        "w_patch": jax.random.normal(k1, (patch_dim, HIDDEN), jnp.float32)
        * (1.0 / jnp.sqrt(patch_dim)),
        "b_patch": jax.random.normal(k2, (1, HIDDEN), jnp.float32) * 0.01,
        "w_proj": jax.random.normal(k3, (HIDDEN, EMBED), jnp.float32)
        * (1.0 / jnp.sqrt(HIDDEN)),
        "b_proj": jax.random.normal(k4, (1, EMBED), jnp.float32) * 0.01,
    }


def extract_cavp_features(frames, params, batch_size=2):
    """Mimics Extract_CAVP_Features.forward.

    The original chunks frames into `batch_size` groups purely to bound device
    memory; per-frame features do not depend on the chunking, so all frames go
    through ONE fused pipeline here (identical concatenated result, without
    per-chunk dispatch overhead).  frames: (N, C, H, W) -> (N, EMBED)."""
    del batch_size  # chunking removed from the hot path; results unchanged
    return encode_video(frames, params["w_patch"], params["b_patch"],
                        params["w_proj"], params["b_proj"])


# ---------------------------------- main ---------------------------------------
if __name__ == "__main__":
    key = jax.random.PRNGKey(0)
    kp_, kx_ = jax.random.split(key)
    params = init_params(kp_)

    # Small synthetic "video": 12 frames, 3 channels, 64x64 (stands in for the
    # 224x224 RGB frames the module would produce via cv2 + transforms).
    frames = jax.random.uniform(kx_, (12, 3, 64, 64), jnp.float32)

    # Default tiling: frame_tile=8 -> 8-frame main call + 4-frame remainder call.
    feats = extract_cavp_features(frames, params)
    feats = jax.block_until_ready(feats)
    assert feats.shape == (12, EMBED), feats.shape

    # Explicit multi-block patch grid (4 patch blocks), exercising the VMEM
    # accumulator init/accumulate/finalize path plus the remainder call.
    feats_tiled = encode_video(
        frames, params["w_patch"], params["b_patch"],
        params["w_proj"], params["b_proj"], frame_tile=8, patch_tile=16)
    feats_tiled = jax.block_until_ready(feats_tiled)

    ref = encode_video_reference(frames, params)

    norms = jnp.linalg.norm(feats, axis=-1)
    assert jnp.allclose(norms, 1.0, atol=1e-3), norms
    assert jnp.allclose(feats, feats_tiled, atol=1e-4), \
        jnp.max(jnp.abs(feats - feats_tiled))
    assert jnp.allclose(feats, ref, atol=2e-2), jnp.max(jnp.abs(feats - ref))
    print("KERNEL_OK")
</pallas_src>

<mosaic_0001>
module attributes {stable_mosaic.version = 11 : i64} {
  func.func @_cavp_encode_kernel(%arg0: i32, %arg1: i32, %arg2: memref<4x64x192xbf16, #tpu.memory_space<vmem>>, %arg3: memref<192x128xbf16, #tpu.memory_space<vmem>>, %arg4: memref<1x128xf32, #tpu.memory_space<vmem>>, %arg5: memref<128x128xbf16, #tpu.memory_space<vmem>>, %arg6: memref<1x128xf32, #tpu.memory_space<vmem>>, %arg7: memref<4x128xf32, #tpu.memory_space<vmem>>, %arg8: memref<4x128xf32, #tpu.memory_space<vmem>>) attributes {dimension_semantics = [#tpu.dimension_semantics<parallel>, #tpu.dimension_semantics<arbitrary>], iteration_bounds = array<i64: 1, 1>, scalar_prefetch = 0 : i64, scratch_operands = 1 : i64, tpu.core_type = #tpu.core_type<tc>, window_params = [{transform_indices = @transform_0, window_bounds = array<i64: 4, 64, 192>}, {pipeline_mode = #tpu.pipeline_mode<synchronous>, transform_indices = @transform_1, window_bounds = array<i64: 192, 128>}, {pipeline_mode = #tpu.pipeline_mode<synchronous>, transform_indices = @transform_2, window_bounds = array<i64: 1, 128>}, {pipeline_mode = #tpu.pipeline_mode<synchronous>, transform_indices = @transform_3, window_bounds = array<i64: 128, 128>}, {pipeline_mode = #tpu.pipeline_mode<synchronous>, transform_indices = @transform_4, window_bounds = array<i64: 1, 128>}, {transform_indices = @transform_5, window_bounds = array<i64: 4, 128>}]} {
    %c0_i32 = arith.constant 0 : i32
    %0 = arith.cmpi eq, %arg1, %c0_i32 : i32
    %1 = arith.extui %0 : i1 to i32
    %c0_i32_0 = arith.constant 0 : i32
    %2 = arith.cmpi ne, %1, %c0_i32_0 : i32
    scf.if %2 {
      %cst_15 = arith.constant 0.000000e+00 : f32
      %20 = vector.broadcast %cst_15 : f32 to vector<4x128xf32>
      %c0_16 = arith.constant 0 : index
      %c0_17 = arith.constant 0 : index
      %21 = vector.load %arg8[%c0_16, %c0_17] : memref<4x128xf32, #tpu.memory_space<vmem>>, vector<4x128xf32>
      tpu.vector_store %arg8[%c0_16, %c0_17], %20 {strides = array<i32>} : memref<4x128xf32, #tpu.memory_space<vmem>>, vector<4x128xf32>,
    } else {
    }
    %c0 = arith.constant 0 : index
    %c0_1 = arith.constant 0 : index
    %c0_2 = arith.constant 0 : index
    %3 = vector.load %arg2[%c0, %c0_1, %c0_2] : memref<4x64x192xbf16, #tpu.memory_space<vmem>>, vector<4x64x192xbf16>
    %4 = vector.shape_cast %3 : vector<4x64x192xbf16> to vector<256x192xbf16>
    %c0_3 = arith.constant 0 : index
    %c0_4 = arith.constant 0 : index
    %5 = vector.load %arg3[%c0_3, %c0_4] : memref<192x128xbf16, #tpu.memory_space<vmem>>, vector<192x128xbf16>
    %cst = arith.constant dense<0.000000e+00> : vector<256x128xf32>
    %6 = tpu.matmul %4, %5, %cst {dimension_numbers = #tpu.dot_dimension_numbers<[1], [0], [0], [1], [0, 0, 1, 1], [], []>} : vector<256x192xbf16>, vector<192x128xbf16>, vector<256x128xf32> -> vector<256x128xf32>
    %c0_5 = arith.constant 0 : index
    %c0_6 = arith.constant 0 : index
    %7 = vector.load %arg4[%c0_5, %c0_6] : memref<1x128xf32, #tpu.memory_space<vmem>>, vector<1x128xf32>
    %8 = vector.broadcast %7 : vector<1x128xf32> to vector<256x128xf32>
    %9 = arith.addf %6, %8 : vector<256x128xf32>
    %cst_7 = arith.constant 0.000000e+00 : f32
    %10 = vector.broadcast %cst_7 : f32 to vector<256x128xf32>
    %11 = arith.maximumf %9, %10 : vector<256x128xf32>
    %c0_8 = arith.constant 0 : index
    %c0_9 = arith.constant 0 : index
    %12 = vector.load %arg8[%c0_8, %c0_9] : memref<4x128xf32, #tpu.memory_space<vmem>>, vector<4x128xf32>
    %13 = vector.shape_cast %11 : vector<256x128xf32> to vector<4x64x128xf32>
    %cst_10 = arith.constant dense<0.000000e+00> : vector<4x128xf32>
    %14 = vector.multi_reduction <add>, %13, %cst_10 [1] : vector<4x64x128xf32> to vector<4x128xf32>
    %15 = arith.addf %12, %14 : vector<4x128xf32>
    %c0_11 = arith.constant 0 : index
    %c0_12 = arith.constant 0 : index
    %16 = vector.load %arg8[%c0_11, %c0_12] : memref<4x128xf32, #tpu.memory_space<vmem>>, vector<4x128xf32>
    tpu.vector_store %arg8[%c0_11, %c0_12], %15 {strides = array<i32>} : memref<4x128xf32, #tpu.memory_space<vmem>>, vector<4x128xf32>,
    %c0_i32_13 = arith.constant 0 : i32
    %17 = arith.cmpi eq, %arg1, %c0_i32_13 : i32
    %18 = arith.extui %17 : i1 to i32
    %c0_i32_14 = arith.constant 0 : i32
    %19 = arith.cmpi ne, %18, %c0_i32_14 : i32
    scf.if %19 {
      %c0_15 = arith.constant 0 : index
      %c0_16 = arith.constant 0 : index
      %20 = vector.load %arg8[%c0_15, %c0_16] : memref<4x128xf32, #tpu.memory_space<vmem>>, vector<4x128xf32>
      %cst_17 = arith.constant 1.562500e-02 : f32
      %21 = vector.broadcast %cst_17 : f32 to vector<4x128xf32>
      %22 = arith.mulf %20, %21 : vector<4x128xf32>
      %23 = arith.truncf %22 : vector<4x128xf32> to vector<4x128xbf16>
      %c0_18 = arith.constant 0 : index
      %c0_19 = arith.constant 0 : index
      %24 = vector.load %arg5[%c0_18, %c0_19] : memref<128x128xbf16, #tpu.memory_space<vmem>>, vector<128x128xbf16>
      %cst_20 = arith.constant dense<0.000000e+00> : vector<4x128xf32>
      %25 = tpu.matmul %23, %24, %cst_20 {dimension_numbers = #tpu.dot_dimension_numbers<[1], [0], [0], [1], [0, 0, 1, 1], [], []>} : vector<4x128xbf16>, vector<128x128xbf16>, vector<4x128xf32> -> vector<4x128xf32>
      %c0_21 = arith.constant 0 : index
      %c0_22 = arith.constant 0 : index
      %26 = vector.load %arg6[%c0_21, %c0_22] : memref<1x128xf32, #tpu.memory_space<vmem>>, vector<1x128xf32>
      %27 = vector.broadcast %26 : vector<1x128xf32> to vector<4x128xf32>
      %28 = arith.addf %25, %27 : vector<4x128xf32>
      %29 = arith.mulf %28, %28 : vector<4x128xf32>
      %cst_23 = arith.constant dense<0.000000e+00> : vector<4xf32>
      %30 = vector.multi_reduction <add>, %29, %cst_23 [1] : vector<4x128xf32> to vector<4xf32>
      %31 = vector.shape_cast %30 : vector<4xf32> to vector<4x1xf32>
      %cst_24 = arith.constant 9.99999996E-13 : f32
      %32 = vector.broadcast %cst_24 : f32 to vector<4x1xf32>
      %33 = arith.addf %31, %32 : vector<4x1xf32>
      %34 = math.rsqrt %33 : vector<4x1xf32>
      %35 = vector.broadcast %34 : vector<4x1xf32> to vector<4x128xf32>
      %36 = arith.mulf %28, %35 : vector<4x128xf32>
      %c0_25 = arith.constant 0 : index
      %c0_26 = arith.constant 0 : index
      %37 = vector.load %arg7[%c0_25, %c0_26] : memref<4x128xf32, #tpu.memory_space<vmem>>, vector<4x128xf32>
      tpu.vector_store %arg7[%c0_25, %c0_26], %36 {strides = array<i32>} : memref<4x128xf32, #tpu.memory_space<vmem>>, vector<4x128xf32>,
    } else {
    }
    return
  }
  func.func @transform_0(%arg0: i32, %arg1: i32) -> (i32, i32, i32) {
    %c0_i32 = arith.constant 0 : i32
    %c0_i32_0 = arith.constant 0 : i32
    return %arg0, %arg1, %c0_i32 : i32, i32, i32
  }
  func.func @transform_1(%arg0: i32, %arg1: i32) -> (i32, i32) {
    %c0_i32 = arith.constant 0 : i32
    %c0_i32_0 = arith.constant 0 : i32
    %c0_i32_1 = arith.constant 0 : i32
    return %c0_i32, %c0_i32_0 : i32, i32
  }
  func.func @transform_2(%arg0: i32, %arg1: i32) -> (i32, i32) {
    %c0_i32 = arith.constant 0 : i32
    %c0_i32_0 = arith.constant 0 : i32
    %c0_i32_1 = arith.constant 0 : i32
    return %c0_i32, %c0_i32_0 : i32, i32
  }
  func.func @transform_3(%arg0: i32, %arg1: i32) -> (i32, i32) {
    %c0_i32 = arith.constant 0 : i32
    %c0_i32_0 = arith.constant 0 : i32
    %c0_i32_1 = arith.constant 0 : i32
    return %c0_i32, %c0_i32_0 : i32, i32
  }
  func.func @transform_4(%arg0: i32, %arg1: i32) -> (i32, i32) {
    %c0_i32 = arith.constant 0 : i32
    %c0_i32_0 = arith.constant 0 : i32
    %c0_i32_1 = arith.constant 0 : i32
    return %c0_i32, %c0_i32_0 : i32, i32
  }
  func.func @transform_5(%arg0: i32, %arg1: i32) -> (i32, i32) {
    %c0_i32 = arith.constant 0 : i32
    %c0_i32_0 = arith.constant 0 : i32
    return %arg0, %c0_i32 : i32, i32
  }
}

module attributes {stable_mosaic.version = 11 : i64} {
  func.func @_cavp_encode_kernel(%arg0: i32, %arg1: i32, %arg2: memref<8x64x192xbf16, #tpu.memory_space<vmem>>, %arg3: memref<192x128xbf16, #tpu.memory_space<vmem>>, %arg4: memref<1x128xf32, #tpu.memory_space<vmem>>, %arg5: memref<128x128xbf16, #tpu.memory_space<vmem>>, %arg6: memref<1x128xf32, #tpu.memory_space<vmem>>, %arg7: memref<8x128xf32, #tpu.memory_space<vmem>>, %arg8: memref<8x128xf32, #tpu.memory_space<vmem>>) attributes {dimension_semantics = [#tpu.dimension_semantics<parallel>, #tpu.dimension_semantics<arbitrary>], iteration_bounds = array<i64: 1, 1>, scalar_prefetch = 0 : i64, scratch_operands = 1 : i64, tpu.core_type = #tpu.core_type<tc>, window_params = [{transform_indices = @transform_0, window_bounds = array<i64: 8, 64, 192>}, {pipeline_mode = #tpu.pipeline_mode<synchronous>, transform_indices = @transform_1, window_bounds = array<i64: 192, 128>}, {pipeline_mode = #tpu.pipeline_mode<synchronous>, transform_indices = @transform_2, window_bounds = array<i64: 1, 128>}, {pipeline_mode = #tpu.pipeline_mode<synchronous>, transform_indices = @transform_3, window_bounds = array<i64: 128, 128>}, {pipeline_mode = #tpu.pipeline_mode<synchronous>, transform_indices = @transform_4, window_bounds = array<i64: 1, 128>}, {transform_indices = @transform_5, window_bounds = array<i64: 8, 128>}]} {
    %c0_i32 = arith.constant 0 : i32
    %0 = arith.cmpi eq, %arg1, %c0_i32 : i32
    %1 = arith.extui %0 : i1 to i32
    %c0_i32_0 = arith.constant 0 : i32
    %2 = arith.cmpi ne, %1, %c0_i32_0 : i32
    scf.if %2 {
      %cst_15 = arith.constant 0.000000e+00 : f32
      %20 = vector.broadcast %cst_15 : f32 to vector<8x128xf32>
      %c0_16 = arith.constant 0 : index
      %c0_17 = arith.constant 0 : index
      %21 = vector.load %arg8[%c0_16, %c0_17] : memref<8x128xf32, #tpu.memory_space<vmem>>, vector<8x128xf32>
      tpu.vector_store %arg8[%c0_16, %c0_17], %20 {strides = array<i32>} : memref<8x128xf32, #tpu.memory_space<vmem>>, vector<8x128xf32>,
    } else {
    }
    %c0 = arith.constant 0 : index
    %c0_1 = arith.constant 0 : index
    %c0_2 = arith.constant 0 : index
    %3 = vector.load %arg2[%c0, %c0_1, %c0_2] : memref<8x64x192xbf16, #tpu.memory_space<vmem>>, vector<8x64x192xbf16>
    %4 = vector.shape_cast %3 : vector<8x64x192xbf16> to vector<512x192xbf16>
    %c0_3 = arith.constant 0 : index
    %c0_4 = arith.constant 0 : index
    %5 = vector.load %arg3[%c0_3, %c0_4] : memref<192x128xbf16, #tpu.memory_space<vmem>>, vector<192x128xbf16>
    %cst = arith.constant dense<0.000000e+00> : vector<512x128xf32>
    %6 = tpu.matmul %4, %5, %cst {dimension_numbers = #tpu.dot_dimension_numbers<[1], [0], [0], [1], [0, 0, 1, 1], [], []>} : vector<512x192xbf16>, vector<192x128xbf16>, vector<512x128xf32> -> vector<512x128xf32>
    %c0_5 = arith.constant 0 : index
    %c0_6 = arith.constant 0 : index
    %7 = vector.load %arg4[%c0_5, %c0_6] : memref<1x128xf32, #tpu.memory_space<vmem>>, vector<1x128xf32>
    %8 = vector.broadcast %7 : vector<1x128xf32> to vector<512x128xf32>
    %9 = arith.addf %6, %8 : vector<512x128xf32>
    %cst_7 = arith.constant 0.000000e+00 : f32
    %10 = vector.broadcast %cst_7 : f32 to vector<512x128xf32>
    %11 = arith.maximumf %9, %10 : vector<512x128xf32>
    %c0_8 = arith.constant 0 : index
    %c0_9 = arith.constant 0 : index
    %12 = vector.load %arg8[%c0_8, %c0_9] : memref<8x128xf32, #tpu.memory_space<vmem>>, vector<8x128xf32>
    %13 = vector.shape_cast %11 : vector<512x128xf32> to vector<8x64x128xf32>
    %cst_10 = arith.constant dense<0.000000e+00> : vector<8x128xf32>
    %14 = vector.multi_reduction <add>, %13, %cst_10 [1] : vector<8x64x128xf32> to vector<8x128xf32>
    %15 = arith.addf %12, %14 : vector<8x128xf32>
    %c0_11 = arith.constant 0 : index
    %c0_12 = arith.constant 0 : index
    %16 = vector.load %arg8[%c0_11, %c0_12] : memref<8x128xf32, #tpu.memory_space<vmem>>, vector<8x128xf32>
    tpu.vector_store %arg8[%c0_11, %c0_12], %15 {strides = array<i32>} : memref<8x128xf32, #tpu.memory_space<vmem>>, vector<8x128xf32>,
    %c0_i32_13 = arith.constant 0 : i32
    %17 = arith.cmpi eq, %arg1, %c0_i32_13 : i32
    %18 = arith.extui %17 : i1 to i32
    %c0_i32_14 = arith.constant 0 : i32
    %19 = arith.cmpi ne, %18, %c0_i32_14 : i32
    scf.if %19 {
      %c0_15 = arith.constant 0 : index
      %c0_16 = arith.constant 0 : index
      %20 = vector.load %arg8[%c0_15, %c0_16] : memref<8x128xf32, #tpu.memory_space<vmem>>, vector<8x128xf32>
      %cst_17 = arith.constant 1.562500e-02 : f32
      %21 = vector.broadcast %cst_17 : f32 to vector<8x128xf32>
      %22 = arith.mulf %20, %21 : vector<8x128xf32>
      %23 = arith.truncf %22 : vector<8x128xf32> to vector<8x128xbf16>
      %c0_18 = arith.constant 0 : index
      %c0_19 = arith.constant 0 : index
      %24 = vector.load %arg5[%c0_18, %c0_19] : memref<128x128xbf16, #tpu.memory_space<vmem>>, vector<128x128xbf16>
      %cst_20 = arith.constant dense<0.000000e+00> : vector<8x128xf32>
      %25 = tpu.matmul %23, %24, %cst_20 {dimension_numbers = #tpu.dot_dimension_numbers<[1], [0], [0], [1], [0, 0, 1, 1], [], []>} : vector<8x128xbf16>, vector<128x128xbf16>, vector<8x128xf32> -> vector<8x128xf32>
      %c0_21 = arith.constant 0 : index
      %c0_22 = arith.constant 0 : index
      %26 = vector.load %arg6[%c0_21, %c0_22] : memref<1x128xf32, #tpu.memory_space<vmem>>, vector<1x128xf32>
      %27 = vector.broadcast %26 : vector<1x128xf32> to vector<8x128xf32>
      %28 = arith.addf %25, %27 : vector<8x128xf32>
      %29 = arith.mulf %28, %28 : vector<8x128xf32>
      %cst_23 = arith.constant dense<0.000000e+00> : vector<8xf32>
      %30 = vector.multi_reduction <add>, %29, %cst_23 [1] : vector<8x128xf32> to vector<8xf32>
      %31 = vector.shape_cast %30 : vector<8xf32> to vector<8x1xf32>
      %cst_24 = arith.constant 9.99999996E-13 : f32
      %32 = vector.broadcast %cst_24 : f32 to vector<8x1xf32>
      %33 = arith.addf %31, %32 : vector<8x1xf32>
      %34 = math.rsqrt %33 : vector<8x1xf32>
      %35 = vector.broadcast %34 : vector<8x1xf32> to vector<8x128xf32>
      %36 = arith.mulf %28, %35 : vector<8x128xf32>
      %c0_25 = arith.constant 0 : index
      %c0_26 = arith.constant 0 : index
      %37 = vector.load %arg7[%c0_25, %c0_26] : memref<8x128xf32, #tpu.memory_space<vmem>>, vector<8x128xf32>
      tpu.vector_store %arg7[%c0_25, %c0_26], %36 {strides = array<i32>} : memref<8x128xf32, #tpu.memory_space<vmem>>, vector<8x128xf32>,
    } else {
    }
    return
  }
  func.func @transform_0(%arg0: i32, %arg1: i32) -> (i32, i32, i32) {
    %c0_i32 = arith.constant 0 : i32
    %c0_i32_0 = arith.constant 0 : i32
    return %arg0, %arg1, %c0_i32 : i32, i32, i32
  }
  func.func @transform_1(%arg0: i32, %arg1: i32) -> (i32, i32) {
    %c0_i32 = arith.constant 0 : i32
    %c0_i32_0 = arith.constant 0 : i32
    %c0_i32_1 = arith.constant 0 : i32
    return %c0_i32, %c0_i32_0 : i32, i32
  }
  func.func @transform_2(%arg0: i32, %arg1: i32) -> (i32, i32) {
    %c0_i32 = arith.constant 0 : i32
    %c0_i32_0 = arith.constant 0 : i32
    %c0_i32_1 = arith.constant 0 : i32
    return %c0_i32, %c0_i32_0 : i32, i32
  }
  func.func @transform_3(%arg0: i32, %arg1: i32) -> (i32, i32) {
    %c0_i32 = arith.constant 0 : i32
    %c0_i32_0 = arith.constant 0 : i32
    %c0_i32_1 = arith.constant 0 : i32
    return %c0_i32, %c0_i32_0 : i32, i32
  }
  func.func @transform_4(%arg0: i32, %arg1: i32) -> (i32, i32) {
    %c0_i32 = arith.constant 0 : i32
    %c0_i32_0 = arith.constant 0 : i32
    %c0_i32_1 = arith.constant 0 : i32
    return %c0_i32, %c0_i32_0 : i32, i32
  }
  func.func @transform_5(%arg0: i32, %arg1: i32) -> (i32, i32) {
    %c0_i32 = arith.constant 0 : i32
    %c0_i32_0 = arith.constant 0 : i32
    return %arg0, %c0_i32 : i32, i32
  }
}

</mosaic_0001>

<bundles_post_ra>
// kernel: encode_video.3
= control target key start
LH: loop header
LB: loop body
LE: loop exit
PB: predicated region body
PF: predicated region fallthrough
CT: control target
= control target key end

     0   :  { %vm302_vm0 = vcmask 523264   ;;  %vm618_vm1 = vcmask 1041409   ;;  %vm620_vm2 = vcmask 1042434   ;;  %vm622_vm3 = vcmask 1043459   ;;  %s1402_s1 = inlined_call_operand.vmem [shape: bf16[192,128], index: 1, kind: input, shape index: {}]   ;;  %s1403_s0 = inlined_call_operand.vmem [shape: bf16[4,64,192], index: 0, kind: input, shape index: {}]   ;;  %s1404_s2 = inlined_call_operand.vmem [shape: f32[1,128], index: 2, kind: input, shape index: {}]   ;;  %s1405_s3 = inlined_call_operand.vmem [shape: bf16[128,128], index: 3, kind: input, shape index: {}]   ;;  %s1406_s4 = inlined_call_operand.vmem [shape: f32[1,128], index: 4, kind: input, shape index: {}]   ;;  %s1407_s5 = inlined_call_operand.vmem [shape: f32[4,128], index: 5, kind: output, shape index: {}]  }
   0x1   :  { %v999_v0 = vld [vmem:[%s1402_s1 + $0x38] sm:$0xff]  ;;  %v998_v2 = vld [vmem:[%s1402_s1 + $0x30] sm:$0xff]  ;;  %v997_v4 = vld [vmem:[%s1402_s1 + $0x28] sm:$0xff]  ;;  %vm715_vm4 = vcmask 1043456  }
   0x2   :  { %v1003_v1 = vld [vmem:[%s1402_s1 + $0x58] sm:$0xff]  ;;  %351 = vmatpush.bf16.msra.mxu0 %v999_v0  ;;  %1012 = vmatpush.bf16.msra.mxu3 %v999_v0  ;;  %v1002_v3 = vld [vmem:[%s1402_s1 + $0x50] sm:$0xff]  ;;  %v1001_v5 = vld [vmem:[%s1402_s1 + $0x48] sm:$0xff] }
   0x3   :  { %444 = vmatpush.bf16.msra.mxu1 %v1003_v1  ;;  %1020 = vmatpush.bf16.msra.mxu2 %v1003_v1  ;;  %v996_v6 = vld [vmem:[%s1402_s1 + $0x20] sm:$0xff]  ;;  %v740_v9 = vld [vmem:[%s1403_s0 + $0x8] sm:$0xf0]  ;;  %v978_v10 = vld [vmem:[%s1403_s0 + $0x94] sm:$0xf] }
   0x4   :  { %v1000_v7 = vld [vmem:[%s1402_s1 + $0x40] sm:$0xff]  ;;  %v812_v11 = vld [vmem:[%s1403_s0 + $0x98] sm:$0xf0]  ;;  %v994_v15 = vld [vmem:[%s1402_s1 + $0x10] sm:$0xff] }
   0x5   :  { %v960_v8 = vld [vmem:[%s1403_s0 + $0x4] sm:$0xf]  ;;  %v995_v13 = vld [vmem:[%s1402_s1 + $0x18] sm:$0xff]  ;;  %v815_v14 = vor.u32 %v978_v10, %v812_v11  ;;  %v993_v16 = vld [vmem:[%s1402_s1 + $0x8] sm:$0xff] }
   0x6   :  { %352 = vmatpush.bf16.msra.mxu0 %v998_v2  ;;  %1013 = vmatpush.bf16.msra.mxu3 %v998_v2  ;;  %v743_v12 = vor.u32 %v960_v8, %v740_v9  ;;  %v992_v17 = vld [vmem:[%s1402_s1] sm:$0xff]  ;;  %v961_v19 = vld [vmem:[%s1403_s0 + $0x4] sm:$0xf0]  ;;  %v962_v22 = vld [vmem:[%s1403_s0 + $0x14] sm:$0xf] }
   0x7   :  { %445 = vmatpush.bf16.msra.mxu1 %v1002_v3  ;;  %1021 = vmatpush.bf16.msra.mxu2 %v1002_v3  ;;  %v738_v18 = vld [vmem:[%s1403_s0] sm:$0xf]  ;;  %v977_v21 = vld [vmem:[%s1403_s0 + $0x84] sm:$0xf0]  ;;  %v748_v23 = vld [vmem:[%s1403_s0 + $0x18] sm:$0xf0] }
   0x8   :  { %v802_v20 = vld [vmem:[%s1403_s0 + $0x80] sm:$0xf]  ;;  %v980_v24 = vld [vmem:[%s1403_s0 + $0xa4] sm:$0xf]  ;;  %v820_v25 = vld [vmem:[%s1403_s0 + $0xa8] sm:$0xf0]  ;;  %v739_v26 = vor.u32 %v961_v19, %v738_v18  ;;  %v751_v28 = vor.u32 %v962_v22, %v748_v23 }
   0x9   :  { %v803_v27 = vor.u32 %v977_v21, %v802_v20  ;;  %v823_v29 = vor.u32 %v980_v24, %v820_v25  ;;  %v746_v30 = vld [vmem:[%s1403_s0 + $0x10] sm:$0xf]  ;;  %v963_v31 = vld [vmem:[%s1403_s0 + $0x14] sm:$0xf0]  ;;  %v964_v34 = vld [vmem:[%s1403_s0 + $0x24] sm:$0xf] }
   0xa   :  { %353 = vmatpush.bf16.msra.mxu0 %v997_v4  ;;  %1014 = vmatpush.bf16.msra.mxu3 %v997_v4  ;;  %v810_v32 = vld [vmem:[%s1403_s0 + $0x90] sm:$0xf]  ;;  %v979_v33 = vld [vmem:[%s1403_s0 + $0x94] sm:$0xf0]  ;;  %v756_v35 = vld [vmem:[%s1403_s0 + $0x28] sm:$0xf0]  ;;  %v747_v38 = vor.u32 %v963_v31, %v746_v30 }
   0xb   :  { %446 = vmatpush.bf16.msra.mxu1 %v1001_v5  ;;  %1022 = vmatpush.bf16.msra.mxu2 %v1001_v5  ;;  %v982_v36 = vld [vmem:[%s1403_s0 + $0xb4] sm:$0xf]  ;;  %v828_v37 = vld [vmem:[%s1403_s0 + $0xb8] sm:$0xf0]  ;;  %v811_v39 = vor.u32 %v979_v33, %v810_v32  ;;  %v759_v40 = vor.u32 %v964_v34, %v756_v35  ;;  %v754_v42 = vld [vmem:[%s1403_s0 + $0x20] sm:$0xf] }
   0xc   :  { %v831_v41 = vor.u32 %v982_v36, %v828_v37  ;;  %v965_v43 = vld [vmem:[%s1403_s0 + $0x24] sm:$0xf0]  ;;  %v818_v44 = vld [vmem:[%s1403_s0 + $0xa0] sm:$0xf]  ;;  %v966_v46 = vld [vmem:[%s1403_s0 + $0x34] sm:$0xf] }
   0xd   :  { %v981_v45 = vld [vmem:[%s1403_s0 + $0xa4] sm:$0xf0]  ;;  %v764_v47 = vld [vmem:[%s1403_s0 + $0x38] sm:$0xf0]  ;;  %v984_v48 = vld [vmem:[%s1403_s0 + $0xc4] sm:$0xf]  ;;  %v755_v50 = vor.u32 %v965_v43, %v754_v42 }
   0xe   :  { %354 = vmatpush.bf16.msra.mxu0 %v996_v6  ;;  %1015 = vmatpush.bf16.msra.mxu3 %v996_v6  ;;  %v836_v49 = vld [vmem:[%s1403_s0 + $0xc8] sm:$0xf0]  ;;  %v819_v51 = vor.u32 %v981_v45, %v818_v44  ;;  %v767_v52 = vor.u32 %v966_v46, %v764_v47  ;;  %v762_v54 = vld [vmem:[%s1403_s0 + $0x30] sm:$0xf]  ;;  %v967_v55 = vld [vmem:[%s1403_s0 + $0x34] sm:$0xf0] }
   0xf   :  { %447 = vmatpush.bf16.msra.mxu1 %v1000_v7  ;;  %1023 = vmatpush.bf16.msra.mxu2 %v1000_v7  ;;  %v839_v53 = vor.u32 %v984_v48, %v836_v49  ;;  %v826_v56 = vld [vmem:[%s1403_s0 + $0xb0] sm:$0xf]  ;;  %v983_v57 = vld [vmem:[%s1403_s0 + $0xb4] sm:$0xf0]  ;;  %v968_v58 = vld [vmem:[%s1403_s0 + $0x44] sm:$0xf]  ;;  %v763_v62 = vor.u32 %v967_v55, %v762_v54 }
  0x10   :  { %v772_v59 = vld [vmem:[%s1403_s0 + $0x48] sm:$0xf0]  ;;  %v986_v60 = vld [vmem:[%s1403_s0 + $0xd4] sm:$0xf]  ;;  %v844_v61 = vld [vmem:[%s1403_s0 + $0xd8] sm:$0xf0]  ;;  %v827_v63 = vor.u32 %v983_v57, %v826_v56 }
  0x11   :  { %v775_v0 = vor.u32 %v968_v58, %v772_v59  ;;  %v847_v1 = vor.u32 %v986_v60, %v844_v61  ;;  %v770_v2 = vld [vmem:[%s1403_s0 + $0x40] sm:$0xf]  ;;  %v969_v3 = vld [vmem:[%s1403_s0 + $0x44] sm:$0xf0]  ;;  %v970_v6 = vld [vmem:[%s1403_s0 + $0x54] sm:$0xf] }
  0x12   :  { %912 = vmatmul.msk.bf16.vlgmr.msra.gmra.mxu1 %vm302_vm0, %v743_v12  ;;  %355 = vmatpush.bf16.msra.mxu0 %v995_v13  ;;  %v834_v4 = vld [vmem:[%s1403_s0 + $0xc0] sm:$0xf]  ;;  %v985_v5 = vld [vmem:[%s1403_s0 + $0xc4] sm:$0xf0]  ;;  %v780_v7 = vld [vmem:[%s1403_s0 + $0x58] sm:$0xf0]  ;;  %v771_v10 = vor.u32 %v969_v3, %v770_v2 }
  0x13   :  { %1016 = vmatpush.bf16.msra.mxu3 %v995_v13  ;;  %921 = vmatmul.msk.bf16.vlgmr.msra.gmra.mxu2 %vm302_vm0, %v815_v14  ;;  %v988_v8 = vld [vmem:[%s1403_s0 + $0xe4] sm:$0xf]  ;;  %v852_v9 = vld [vmem:[%s1403_s0 + $0xe8] sm:$0xf0]  ;;  %v835_v11 = vor.u32 %v985_v5, %v834_v4  ;;  %v783_v12 = vor.u32 %v970_v6, %v780_v7  ;;  %v778_v14 = vld [vmem:[%s1403_s0 + $0x50] sm:$0xf] }
  0x14   :  { %v855_v13 = vor.u32 %v988_v8, %v852_v9  ;;  %v972_v18 = vld [vmem:[%s1403_s0 + $0x64] sm:$0xf]  ;;  %v788_v19 = vld [vmem:[%s1403_s0 + $0x68] sm:$0xf0]  ;;  %v990_v23 = vld [vmem:[%s1403_s0 + $0xf4] sm:$0xf] }
  0x15   :  { %v791_v22 = vor.u32 %v972_v18, %v788_v19  ;;  %v860_v24 = vld [vmem:[%s1403_s0 + $0xf8] sm:$0xf0]  ;;  %v974_v30 = vld [vmem:[%s1403_s0 + $0x74] sm:$0xf]  ;;  %v794_v35 = vld [vmem:[%s1403_s0 + $0x70] sm:$0xf] }
  0x16   :  { %356 = vmatpush.bf16.msra.mxu0 %v994_v15  ;;  %v863_v25 = vor.u32 %v990_v23, %v860_v24  ;;  %v796_v31 = vld [vmem:[%s1403_s0 + $0x78] sm:$0xf0]  ;;  %v975_v36 = vld [vmem:[%s1403_s0 + $0x74] sm:$0xf0]  ;;  %v858_v37 = vld [vmem:[%s1403_s0 + $0xf0] sm:$0xf] }
  0x17   :  { %1017 = vmatpush.bf16.msra.mxu3 %v994_v15  ;;  %v971_v15 = vld [vmem:[%s1403_s0 + $0x54] sm:$0xf0]  ;;  %v799_v34 = vor.u32 %v974_v30, %v796_v31  ;;  %v1307_v46 = vld [vmem:[%s1404_s2] ss:$0 sm:$0xff] }
  0x18   :  { %v779_v20 = vor.u32 %v971_v15, %v778_v14 }
  0x1a   :  { %357 = vmatpush.bf16.msra.mxu0 %v993_v16 }
  0x1b   :  { %1018 = vmatpush.bf16.msra.mxu3 %v993_v16  ;;  %v842_v16 = vld [vmem:[%s1403_s0 + $0xd0] sm:$0xf] }
  0x1e   :  { %358 = vmatpush.bf16.msra.mxu0 %v992_v17 }
  0x1f   :  { %1019 = vmatpush.bf16.msra.mxu3 %v992_v17  ;;  %v987_v17 = vld [vmem:[%s1403_s0 + $0xd4] sm:$0xf0] }
  0x20   :  { %v843_v21 = vor.u32 %v987_v17, %v842_v16 }
  0x21   :  { %359 = vmatmul.bf16.vlgmr.msra.gmra.mxu0 %v739_v26  ;;  %v786_v26 = vld [vmem:[%s1403_s0 + $0x60] sm:$0xf] }
  0x22   :  { %399 = vmatmul.bf16.vlgmr.msra.gmra.mxu3 %v803_v27  ;;  %913 = vmatmul.msk.bf16.gmra.mxu1 %vm302_vm0, %v751_v28  ;;  %v973_v27 = vld [vmem:[%s1403_s0 + $0x64] sm:$0xf0]  ;;  %v850_v28 = vld [vmem:[%s1403_s0 + $0xe0] sm:$0xf] }
  0x23   :  { %922 = vmatmul.msk.bf16.gmra.mxu2 %vm302_vm0, %v823_v29  ;;  %v989_v29 = vld [vmem:[%s1403_s0 + $0xe4] sm:$0xf0]  ;;  %v787_v32 = vor.u32 %v973_v27, %v786_v26 }
  0x24   :  { %v851_v33 = vor.u32 %v989_v29, %v850_v28 }
  0x31   :  { %364 = vmatmul.bf16.gmra.mxu0 %v747_v38  ;;  %v991_v38 = vld [vmem:[%s1403_s0 + $0xf4] sm:$0xf0] }
  0x32   :  { %404 = vmatmul.bf16.gmra.mxu3 %v811_v39  ;;  %914 = vmatmul.msk.bf16.gmra.mxu1 %vm302_vm0, %v759_v40  ;;  %v976_v39 = vld [vmem:[%s1403_s0 + $0x84] sm:$0xf]  ;;  %v804_v40 = vld [vmem:[%s1403_s0 + $0x88] sm:$0xf0]  ;;  %v859_v42 = vor.u32 %v991_v38, %v858_v37 }
  0x33   :  { %923 = vmatmul.msk.bf16.gmra.mxu2 %vm302_vm0, %v831_v41  ;;  %v795_v41 = vor.u32 %v975_v36, %v794_v35  ;;  %v807_v43 = vor.u32 %v976_v39, %v804_v40 }
  0x41   :  { %369 = vmatmul.bf16.gmra.mxu0 %v755_v50 }
  0x42   :  { %409 = vmatmul.bf16.gmra.mxu3 %v819_v51  ;;  %915 = vmatmul.msk.bf16.gmra.mxu1 %vm302_vm0, %v767_v52 }
  0x43   :  { %924 = vmatmul.msk.bf16.gmra.mxu2 %vm302_vm0, %v839_v53 }
  0x51   :  { %374 = vmatmul.bf16.gmra.mxu0 %v763_v62 }
  0x52   :  { %414 = vmatmul.bf16.gmra.mxu3 %v827_v63  ;;  %916 = vmatmul.msk.bf16.gmra.mxu1 %vm302_vm0, %v775_v0 }
  0x53   :  { %925 = vmatmul.msk.bf16.gmra.mxu2 %vm302_vm0, %v847_v1 }
  0x61   :  { %379 = vmatmul.bf16.gmra.mxu0 %v771_v10 }
  0x62   :  { %419 = vmatmul.bf16.gmra.mxu3 %v835_v11  ;;  %917 = vmatmul.msk.bf16.gmra.mxu1 %vm302_vm0, %v783_v12  ;;  %v1011_v12 = vld [vmem:[%s1405_s3 + $0x38] sm:$0xff] }
  0x63   :  { %926 = vmatmul.msk.bf16.gmra.mxu2 %vm302_vm0, %v855_v13 }
  0x64   :  { %701 = vmatpush.bf16.msrb.mxu2 %v1011_v12 }
  0x71   :  { %384 = vmatmul.bf16.gmra.mxu0 %v779_v20 }
  0x72   :  { %424 = vmatmul.bf16.gmra.mxu3 %v843_v21  ;;  %918 = vmatmul.msk.bf16.gmra.mxu1 %vm302_vm0, %v791_v22 }
  0x73   :  { %927 = vmatmul.msk.bf16.gmra.mxu2 %vm302_vm0, %v863_v25 }
  0x81   :  { %389 = vmatmul.bf16.gmra.mxu0 %v787_v32 }
  0x82   :  { %429 = vmatmul.bf16.gmra.mxu3 %v851_v33  ;;  %919 = vmatmul.msk.bf16.gmra.mxu1 %vm302_vm0, %v799_v34  ;;  %v1010_v33 = vld [vmem:[%s1405_s3 + $0x30] sm:$0xff] }
  0x83   :  { %702 = vmatpush.bf16.msrb.mxu2 %v1010_v33 }
  0x8f   :  { %v449_v44 = vpop.f32.mrf.mxu1 }
  0x91   :  { %394 = vmatmul.bf16.gmra.mxu0 %v795_v41 }
  0x92   :  { %434 = vmatmul.bf16.gmra.mxu3 %v859_v42  ;;  %920 = vmatmul.msk.bf16.gmra.mxu1 %vm302_vm0, %v807_v43 }
  0x96   :  { %v494_v47 = vpop.f32.mrf.mxu2 }
  0x97   :  { %v451_v45 = vpop.f32.mrf.mxu1 }
  0x9e   :  { %v360_v48 = vpop.f32.mrf.mxu0  ;;  %v496_v56 = vpop.f32.mrf.mxu2 }
  0x9f   :  { %v361_v49 = vadd.f32 %v1307_v46, %v360_v48  ;;  %v454_v50 = vpop.f32.mrf.mxu1  ;;  %v1009_v48 = vld [vmem:[%s1405_s3 + $0x28] sm:$0xff] }
  0xa0   :  { %703 = vmatpush.bf16.msrb.mxu2 %v1009_v48 }
  0xa1   :  { %v450_v51 = vadd.f32 %v449_v44, %v361_v49 }
  0xa3   :  { %v529_v58 = vmax.f32 %v450_v51, 0.0 }
  0xa5   :  { %v1310_v52 = vpop.f32.mrf.mxu3 }
  0xa6   :  { %v362_v53 = vpop.f32.mrf.mxu0  ;;  %v499_v2 = vpop.f32.mrf.mxu2 }
  0xa7   :  { %v363_v54 = vadd.f32 %v1307_v46, %v362_v53  ;;  %v456_v55 = vpop.f32.mrf.mxu1 }
  0xa9   :  { %v452_v57 = vadd.f32 %v451_v45, %v363_v54 }
  0xab   :  { %v530_v59 = vmax.f32 %v452_v57, 0.0 }
  0xad   :  { %v562_v60 = vadd.f32 %v530_v59, %v529_v58  ;;  %v1313_v61 = vpop.f32.mrf.mxu3 }
  0xae   :  { %v365_v62 = vpop.f32.mrf.mxu0  ;;  %v501_v14 = vpop.f32.mrf.mxu2 }
  0xaf   :  { %v366_v63 = vadd.f32 %v1307_v46, %v365_v62  ;;  %v459_v0 = vpop.f32.mrf.mxu1 }
  0xb1   :  { %v455_v1 = vadd.f32 %v454_v50, %v366_v63 }
  0xb3   :  { %v531_v3 = vmax.f32 %v455_v1, 0.0  ;;  %v1008_v1 = vld [vmem:[%s1405_s3 + $0x20] sm:$0xff] }
  0xb4   :  { %704 = vmatpush.bf16.msrb.mxu2 %v1008_v1 }
  0xb5   :  { %v563_v4 = vadd.f32 %v562_v60, %v531_v3  ;;  %v405_v5 = vpop.f32.mrf.mxu3 }
  0xb6   :  { %v406_v6 = vadd.f32 %v1307_v46, %v405_v5  ;;  %v367_v7 = vpop.f32.mrf.mxu0  ;;  %v504_v26 = vpop.f32.mrf.mxu2 }
  0xb7   :  { %v368_v8 = vadd.f32 %v1307_v46, %v367_v7  ;;  %v461_v9 = vpop.f32.mrf.mxu1 }
  0xb8   :  { %v1318_v10 = vadd.f32 %v494_v47, %v406_v6 }
  0xb9   :  { %v457_v11 = vadd.f32 %v456_v55, %v368_v8  ;;  %v1007_v8 = vld [vmem:[%s1405_s3 + $0x18] sm:$0xff] }
  0xba   :  { %705 = vmatpush.bf16.msrb.mxu2 %v1007_v8 }
  0xbb   :  { %v532_v13 = vmax.f32 %v457_v11, 0.0 }
  0xbd   :  { %v564_v15 = vadd.f32 %v563_v4, %v532_v13  ;;  %v407_v16 = vpop.f32.mrf.mxu3 }
  0xbe   :  { %v408_v17 = vadd.f32 %v1307_v46, %v407_v16  ;;  %v370_v18 = vpop.f32.mrf.mxu0  ;;  %v1336_v41 = vpop.f32.mrf.mxu2 }
  0xbf   :  { %v371_v19 = vadd.f32 %v1307_v46, %v370_v18  ;;  %v464_v20 = vpop.f32.mrf.mxu1 }
  0xc0   :  { %v1325_v21 = vadd.f32 %v496_v56, %v408_v17 }
  0xc1   :  { %v460_v22 = vadd.f32 %v459_v0, %v371_v19 }
  0xc3   :  { %v533_v23 = vmax.f32 %v460_v22, 0.0 }
  0xc5   :  { %v565_v24 = vadd.f32 %v564_v15, %v533_v23  ;;  %v410_v25 = vpop.f32.mrf.mxu3 }
  0xc6   :  { %v411_v27 = vadd.f32 %v1307_v46, %v410_v25  ;;  %v372_v28 = vpop.f32.mrf.mxu0  ;;  %v509_v56 = vpop.f32.mrf.mxu2 }
  0xc7   :  { %v373_v29 = vadd.f32 %v1307_v46, %v372_v28  ;;  %v466_v30 = vpop.f32.mrf.mxu1 }
  0xc8   :  { %v1329_v31 = vadd.f32 %v499_v2, %v411_v27 }
  0xc9   :  { %v462_v32 = vadd.f32 %v461_v9, %v373_v29 }
  0xcb   :  { %v534_v34 = vmax.f32 %v462_v32, 0.0 }
  0xcd   :  { %v566_v35 = vadd.f32 %v565_v24, %v534_v34  ;;  %v412_v36 = vpop.f32.mrf.mxu3 }
  0xce   :  { %v413_v37 = vadd.f32 %v1307_v46, %v412_v36  ;;  %v375_v38 = vpop.f32.mrf.mxu0  ;;  %v511_v63 = vpop.f32.mrf.mxu2 }
  0xcf   :  { %v376_v39 = vadd.f32 %v1307_v46, %v375_v38  ;;  %v469_v40 = vpop.f32.mrf.mxu1 }
  0xd0   :  { %v1338_v42 = vadd.f32 %v501_v14, %v413_v37 }
  0xd1   :  { %v465_v43 = vadd.f32 %v464_v20, %v376_v39 }
  0xd3   :  { %v535_v44 = vmax.f32 %v465_v43, 0.0 }
  0xd5   :  { %v567_v45 = vadd.f32 %v566_v35, %v535_v44  ;;  %v415_v47 = vpop.f32.mrf.mxu3 }
  0xd6   :  { %v416_v49 = vadd.f32 %v1307_v46, %v415_v47  ;;  %v377_v50 = vpop.f32.mrf.mxu0  ;;  %v514_v5 = vpop.f32.mrf.mxu2 }
  0xd7   :  { %v378_v51 = vadd.f32 %v1307_v46, %v377_v50  ;;  %v471_v53 = vpop.f32.mrf.mxu1 }
  0xd8   :  { %v1345_v54 = vadd.f32 %v504_v26, %v416_v49 }
  0xd9   :  { %v467_v55 = vadd.f32 %v466_v30, %v378_v51  ;;  %v1029_v51 = vmov 0.0  }
  0xda   :  { %25 = vst [vmem:[#allocation2] sm:$0xf] %v1029_v51 }
  0xdb   :  { %v536_v57 = vmax.f32 %v467_v55, 0.0 }
  0xdd   :  { %v1347_v58 = vadd.f32 %v567_v45, %v536_v57  ;;  %v1349_v59 = vpop.f32.mrf.mxu3 }
  0xde   :  { %v380_v60 = vpop.f32.mrf.mxu0  ;;  %v516_v13 = vpop.f32.mrf.mxu2 }
  0xdf   :  { %v474_v62 = vpop.f32.mrf.mxu1  ;;  %v381_v20 = vadd.f32 %v1307_v46, %v380_v60 }
  0xe1   :  { %v470_v27 = vadd.f32 %v469_v40, %v381_v20 }
  0xe3   :  { %v537_v39 = vmax.f32 %v470_v27, 0.0 }
  0xe5   :  { %v420_v0 = vpop.f32.mrf.mxu3 }
  0xe6   :  { %v382_v2 = vpop.f32.mrf.mxu0  ;;  %v519_v17 = vpop.f32.mrf.mxu2  ;;  %v421_v33 = vadd.f32 %v1307_v46, %v420_v0 }
  0xe7   :  { %v476_v3 = vpop.f32.mrf.mxu1  ;;  %v383_v18 = vadd.f32 %v1307_v46, %v382_v2 }
  0xe8   :  { %v510_v49 = vadd.f32 %v509_v56, %v421_v33 }
  0xe9   :  { %v472_v25 = vadd.f32 %v471_v53, %v383_v18 }
  0xeb   :  { %v538_v34 = vmax.f32 %v472_v25, 0.0 }
  0xed   :  { %v422_v4 = vpop.f32.mrf.mxu3  ;;  %v575_v53 = vadd.f32 %v538_v34, %v537_v39 }
  0xee   :  { %v385_v6 = vpop.f32.mrf.mxu0  ;;  %v423_v28 = vadd.f32 %v1307_v46, %v422_v4  ;;  %v521_v32 = vpop.f32.mrf.mxu2  ;;  %v569_v4 = vrot.slane %v1347_v58, 4 }
  0xef   :  { %v479_v7 = vpop.f32.mrf.mxu1  ;;  %v386_v23 = vadd.f32 %v1307_v46, %v385_v6 }
  0xf0   :  { %v512_v43 = vadd.f32 %v511_v63, %v423_v28 }
  0xf1   :  { %v475_v29 = vadd.f32 %v474_v62, %v386_v23 }
  0xf2   :  { %v554_v0 = vmax.f32 %v512_v43, 0.0  ;;  %v547_v43 = vmax.f32 %v1318_v10, 0.0 }
  0xf3   :  { %v539_v45 = vmax.f32 %v475_v29, 0.0  ;;  %v570_v29 = vadd.f32 %v569_v4, %v1347_v58  ;;  %v1004_v58 = vld [vmem:[%s1405_s3] sm:$0xff] }
  0xf5   :  { %v425_v9 = vpop.f32.mrf.mxu3  ;;  %v576_v1 = vadd.f32 %v575_v53, %v539_v45 }
  0xf6   :  { %v387_v11 = vpop.f32.mrf.mxu0  ;;  %v426_v35 = vadd.f32 %v1307_v46, %v425_v9 }
  0xf7   :  { %v481_v12 = vpop.f32.mrf.mxu1  ;;  %v388_v26 = vadd.f32 %v1307_v46, %v387_v11 }
  0xf8   :  { %v515_v55 = vadd.f32 %v514_v5, %v426_v35  ;;  %v1006_v5 = vld [vmem:[%s1405_s3 + $0x10] sm:$0xff] }
  0xf9   :  { %v477_v36 = vadd.f32 %v476_v3, %v388_v26  ;;  %v401_v3 = vadd.f32 %v1307_v46, %v1310_v52  ;;  %706 = vmatpush.bf16.msrb.mxu2 %v1006_v5 }
  0xfa   :  { %v555_v8 = vmax.f32 %v515_v55, 0.0 }
  0xfb   :  { %v540_v57 = vmax.f32 %v477_v36, 0.0 }
  0xfd   :  { %v427_v14 = vpop.f32.mrf.mxu3  ;;  %v577_v9 = vadd.f32 %v576_v1, %v540_v57 }
  0xfe   :  { %v390_v15 = vpop.f32.mrf.mxu0  ;;  %v428_v50 = vadd.f32 %v1307_v46, %v427_v14 }
  0xff   :  { %v484_v16 = vpop.f32.mrf.mxu1  ;;  %v391_v30 = vadd.f32 %v1307_v46, %v390_v15  ;;  %v403_v15 = vadd.f32 %v1307_v46, %v1313_v61 }
 0x100   :  { %v517_v56 = vadd.f32 %v516_v13, %v428_v50 }
 0x101   :  { %v480_v40 = vadd.f32 %v479_v7, %v391_v30  ;;  %v553_v7 = vmax.f32 %v510_v49, 0.0 }
 0x102   :  { %v556_v26 = vmax.f32 %v517_v56, 0.0 }
 0x103   :  { %v541_v63 = vmax.f32 %v480_v40, 0.0  ;;  %v571_v40 = vrot.slane %v570_v29, 2 }
 0x105   :  { %v430_v19 = vpop.f32.mrf.mxu3  ;;  %v578_v20 = vadd.f32 %v577_v9, %v541_v63  ;;  %v572_v63 = vadd.f32 %v571_v40, %v570_v29 }
 0x106   :  { %v392_v22 = vpop.f32.mrf.mxu0  ;;  %v431_v62 = vadd.f32 %v1307_v46, %v430_v19  ;;  %v601_v19 = vadd.f32 %v554_v0, %v553_v7 }
 0x107   :  { %v486_v24 = vpop.f32.mrf.mxu1  ;;  %v393_v37 = vadd.f32 %v1307_v46, %v392_v22 }
 0x108   :  { %v602_v30 = vadd.f32 %v601_v19, %v555_v8  ;;  %v573_v8 = vrot.slane %v572_v63, 1 }
 0x109   :  { %v482_v60 = vadd.f32 %v481_v12, %v393_v37  ;;  %v524_v12 = vpop.f32.mrf.mxu2  ;;  %v1005_v37 = vld [vmem:[%s1405_s3 + $0x8] sm:$0xff] }
 0x10a   :  { %707 = vmatpush.bf16.msrb.mxu2 %v1005_v37 }
 0x10b   :  { %v542_v11 = vmax.f32 %v482_v60, 0.0  ;;  %v549_v60 = vmax.f32 %v1329_v31, 0.0 }
 0x10d   :  { %v432_v38 = vpop.f32.mrf.mxu3  ;;  %v579_v33 = vadd.f32 %v578_v20, %v542_v11 }
 0x10e   :  { %v395_v44 = vpop.f32.mrf.mxu0  ;;  %v433_v6 = vadd.f32 %v1307_v46, %v432_v38  ;;  %708 = vmatpush.bf16.msrb.mxu2 %v1004_v58 }
 0x10f   :  { %v396_v47 = vadd.f32 %v1307_v46, %v395_v44  ;;  %v489_v48 = vpop.f32.mrf.mxu1  ;;  %v603_v44 = vadd.f32 %v602_v30, %v556_v26 }
 0x110   :  { %v490_v52 = vadd.f32 %v489_v48, %v401_v3  ;;  %v522_v27 = vadd.f32 %v521_v32, %v433_v6 }
 0x111   :  { %v485_v2 = vadd.f32 %v484_v16, %v396_v47  ;;  %v520_v16 = vadd.f32 %v519_v17, %v431_v62  ;;  %v418_v47 = vadd.f32 %v1307_v46, %v1349_v59  ;;  %v526_v57 = vpop.f32.mrf.mxu2 }
 0x112   :  { %v545_v34 = vmax.f32 %v490_v52, 0.0  ;;  %v558_v32 = vmax.f32 %v522_v27, 0.0  ;;  %v561_v27 = vld [vmem:[#allocation2] sm:$0xf] }
 0x113   :  { %v543_v22 = vmax.f32 %v485_v2, 0.0  ;;  %v557_v17 = vmax.f32 %v520_v16, 0.0  ;;  %v507_v59 = vadd.f32 %v1336_v41, %v418_v47  ;;  %v574_v16 = vadd.f32 %v573_v8, %v572_v63 }
 0x115   :  { %v435_v14 = vpop.f32.mrf.mxu3  ;;  %v580_v38 = vadd.f32 %v579_v33, %v543_v22  ;;  %v604_v50 = vadd.f32 %v603_v44, %v557_v17  ;;  %v552_v9 = vmax.f32 %v507_v59, 0.0 }
 0x116   :  { %v436_v18 = vadd.f32 %v1307_v46, %v435_v14  ;;  %v397_v13 = vpop.f32.mrf.mxu0 }
 0x117   :  { %v398_v23 = vadd.f32 %v1307_v46, %v397_v13  ;;  %v491_v25 = vpop.f32.mrf.mxu1  ;;  %v605_v62 = vadd.f32 %v604_v50, %v558_v32 }
 0x118   :  { %v492_v28 = vadd.f32 %v491_v25, %v403_v15  ;;  %v525_v35 = vadd.f32 %v524_v12, %v436_v18 }
 0x119   :  { %v487_v61 = vadd.f32 %v486_v24, %v398_v23  ;;  %v548_v24 = vmax.f32 %v1325_v21, 0.0  ;;  %v550_v21 = vmax.f32 %v1338_v42, 0.0 }
 0x11a   :  { %v546_v36 = vmax.f32 %v492_v28, 0.0  ;;  %v559_v51 = vmax.f32 %v525_v35, 0.0  ;;  %v1026_v35 = vld [vmem:[%s1406_s4] ss:$0 sm:$0xff] }
 0x11b   :  { %v544_v39 = vmax.f32 %v487_v61, 0.0 }
 0x11c   :  { %v588_v45 = vadd.f32 %v546_v36, %v545_v34  ;;  %v606_v3 = vadd.f32 %v605_v62, %v559_v51 }
 0x11d   :  { %v581_v48 = vadd.f32 %v580_v38, %v544_v39  ;;  %v437_v49 = vpop.f32.mrf.mxu3 }
 0x11e   :  { %v589_v53 = vadd.f32 %v588_v45, %v547_v43  ;;  %v438_v10 = vadd.f32 %v1307_v46, %v437_v49  ;;  %v551_v46 = vmax.f32 %v1345_v54, 0.0 }
 0x11f   :  { %v582_v55 = vrot.slane %v581_v48, 4 }
 0x120   :  { %v590_v0 = vadd.f32 %v589_v53, %v548_v24  ;;  %v527_v1 = vadd.f32 %v526_v57, %v438_v10 }
 0x121   :  { %v583_v2 = vadd.f32 %v582_v55, %v581_v48 }
 0x122   :  { %v591_v4 = vadd.f32 %v590_v0, %v549_v60  ;;  %v560_v56 = vmax.f32 %v527_v1, 0.0 }
 0x123   :  { %v584_v6 = vrot.slane %v583_v2, 2 }
 0x124   :  { %v592_v5 = vadd.f32 %v591_v4, %v550_v21  ;;  %v607_v7 = vadd.f32 %v606_v3, %v560_v56 }
 0x125   :  { %v585_v31 = vadd.f32 %v584_v6, %v583_v2 }
 0x126   :  { %v593_v11 = vadd.f32 %v592_v5, %v551_v46  ;;  %v608_v12 = vrot.slane %v607_v7, 4 }
 0x127   :  { %v586_v14 = vrot.slane %v585_v31, 1 }
 0x128   :  { %v594_v42 = vadd.f32 %v593_v11, %v552_v9  ;;  %v609_v15 = vadd.f32 %v608_v12, %v607_v7 }
 0x129   :  { %v587_v52 = vadd.f32 %v586_v14, %v585_v31 }
 0x12a   :  { %v595_v41 = vrot.slane %v594_v42, 4  ;;  %v610_v18 = vrot.slane %v609_v15, 2 }
 0x12b   :  { %v619_v13 = vsel %vm618_vm1, %v587_v52, %v574_v16 }
 0x12c   :  { %v596_v19 = vadd.f32 %v595_v41, %v594_v42  ;;  %v611_v20 = vadd.f32 %v610_v18, %v609_v15 }
 0x12e   :  { %v597_v22 = vrot.slane %v596_v19, 2  ;;  %v612_v23 = vrot.slane %v611_v20, 1 }
 0x130   :  { %v598_v54 = vadd.f32 %v597_v22, %v596_v19  ;;  %v613_v28 = vadd.f32 %v612_v23, %v611_v20 }
 0x132   :  { %v599_v25 = vrot.slane %v598_v54, 1 }
 0x134   :  { %v600_v26 = vadd.f32 %v599_v25, %v598_v54 }
 0x136   :  { %v621_v29 = vsel %vm620_vm2, %v600_v26, %v619_v13 }
 0x137   :  { %v623_v30 = vsel %vm622_vm3, %v613_v28, %v621_v29 }
 0x138   :  { %v625_v33 = vadd.f32 %v623_v30, %v561_v27 }
 0x13a   :  { %626 = vst [vmem:[#allocation2] sm:$0xf] %v625_v33 }
 0x141   :  { %v630_v61 = vld [vmem:[#allocation2] sm:$0xf] }
 0x142   :  { %v631_v17 = vmul.f32 0.015625, %v630_v61 }
 0x144   :  { %v632_v34 = vpack.c.bf16 %v631_v17, %v631_v17 }
 0x146   :  { %709 = vmatmul.bf16.vlgmr.msrb.gmra.mxu2 %v632_v34 }
 0x1c9   :  { %v710_v36 = vpop.f32.mrf.mxu2 }
 0x1ca   :  { %v711_v37 = vadd.f32 %v1026_v35, %v710_v36 }
 0x1cc   :  { %v714_v38 = vmul.f32 %v711_v37, %v711_v37 }
 0x1ce   :  { %v716_v39 = vsel %vm715_vm4, %v714_v38, 0.0 }
 0x1cf   :  { %717 = vadd.xlane.f32.xlu0 %v716_v39 }
 0x1d1   :  { %v712_v43 = vpop.f32.mrf.mxu2 }
 0x242   :  { %v718_v44 = vpop.xlane.xlu0 %717 }
 0x243   :  { %v719_v32 = vadd.f32 1e-12, %v718_v44 }
 0x245   :  { %1027 = vrsqrt.f32 %v719_v32  ;;  %vm726_vm6 = vweird.f32 %v719_v32 }
 0x24b   :  { %v1028_v45 = vpop.eup %1027 }
 0x24c   :  { %v721_v58 = vmul.f32 %v1028_v45, %v719_v32  ;;  %vm727_vm5 = vweird.f32 %v1028_v45 }
 0x24d   :  { %vm728_vm7 = vmor %vm726_vm6, %vm727_vm5 }
 0x24e   :  { %v722_v24 = vmul.f32 %v1028_v45, %v721_v58 }
 0x250   :  { %v723_v40 = vmul.f32 0.5, %v722_v24 }
 0x252   :  { %v724_v47 = vsub.f32 1.5, %v723_v40 }
 0x254   :  { %v725_v48 = vmul.f32 %v1028_v45, %v724_v47 }
 0x256   :  { %v729_v49 = vsel %vm728_vm7, %v1028_v45, %v725_v48 }
 0x257   :  { %v730_v50 = vmul.f32 %v729_v49, %v711_v37 }
 0x259   :  { %731 = vst [vmem:[%s1407_s5] sm:$0xf] %v730_v50 }

// kernel: encode_video.2
= control target key start
LH: loop header
LB: loop body
LE: loop exit
PB: predicated region body
PF: predicated region fallthrough
CT: control target
= control target key end

     0   :  { %vm478_vm0 = vcmask 523264   ;;  %vm1090_vm1 = vcmask 1041409   ;;  %vm1092_vm2 = vcmask 1042434   ;;  %vm1094_vm3 = vcmask 1043459   ;;  %s2358_s1 = inlined_call_operand.vmem [shape: bf16[192,128], index: 1, kind: input, shape index: {}]   ;;  %s2359_s0 = inlined_call_operand.vmem [shape: bf16[8,64,192], index: 0, kind: input, shape index: {}]   ;;  %s2360_s2 = inlined_call_operand.vmem [shape: f32[1,128], index: 2, kind: input, shape index: {}]   ;;  %s2361_s3 = inlined_call_operand.vmem [shape: bf16[128,128], index: 3, kind: input, shape index: {}]   ;;  %s2362_s4 = inlined_call_operand.vmem [shape: f32[1,128], index: 4, kind: input, shape index: {}]   ;;  %s2363_s5 = inlined_call_operand.vmem [shape: f32[8,128], index: 5, kind: output, shape index: {}]  }
   0x1   :  { %v1653_v0 = vld [vmem:[%s2358_s1 + $0x38] sm:$0xff]  ;;  %v1652_v2 = vld [vmem:[%s2358_s1 + $0x30] sm:$0xff]  ;;  %v1651_v4 = vld [vmem:[%s2358_s1 + $0x28] sm:$0xff]  ;;  %vm1096_vm4 = vcmask 1044484   ;;  %vm1098_vm5 = vcmask 1045509   ;;  %vm1100_vm6 = vcmask 1046534  }
   0x2   :  { %v1657_v1 = vld [vmem:[%s2358_s1 + $0x58] sm:$0xff]  ;;  %575 = vmatpush.bf16.msra.mxu0 %v1653_v0  ;;  %1666 = vmatpush.bf16.msra.mxu3 %v1653_v0  ;;  %v1656_v3 = vld [vmem:[%s2358_s1 + $0x50] sm:$0xff]  ;;  %v1655_v5 = vld [vmem:[%s2358_s1 + $0x48] sm:$0xff]  ;;  %vm1102_vm7 = vcmask 1047559  }
   0x3   :  { %748 = vmatpush.bf16.msra.mxu1 %v1657_v1  ;;  %1674 = vmatpush.bf16.msra.mxu2 %v1657_v1  ;;  %v1650_v6 = vld [vmem:[%s2358_s1 + $0x20] sm:$0xff]  ;;  %v1218_v9 = vld [vmem:[%s2359_s0 + $0x8] sm:$0xf0]  ;;  %v1649_v11 = vld [vmem:[%s2358_s1 + $0x18] sm:$0xff] }
   0x4   :  { %v1654_v7 = vld [vmem:[%s2358_s1 + $0x40] sm:$0xff]  ;;  %v1616_v12 = vld [vmem:[%s2359_s0 + $0x114] sm:$0xf]  ;;  %v1354_v13 = vld [vmem:[%s2359_s0 + $0x118] sm:$0xf0] }
   0x5   :  { %v1582_v8 = vld [vmem:[%s2359_s0 + $0x4] sm:$0xf]  ;;  %v1357_v14 = vor.u32 %v1616_v12, %v1354_v13  ;;  %v1648_v15 = vld [vmem:[%s2358_s1 + $0x10] sm:$0xff]  ;;  %v1647_v16 = vld [vmem:[%s2358_s1 + $0x8] sm:$0xff] }
   0x6   :  { %576 = vmatpush.bf16.msra.mxu0 %v1652_v2  ;;  %1667 = vmatpush.bf16.msra.mxu3 %v1652_v2  ;;  %v1221_v10 = vor.u32 %v1582_v8, %v1218_v9  ;;  %v1646_v17 = vld [vmem:[%s2358_s1] sm:$0xff]  ;;  %v1583_v19 = vld [vmem:[%s2359_s0 + $0x4] sm:$0xf0]  ;;  %v1584_v22 = vld [vmem:[%s2359_s0 + $0x14] sm:$0xf] }
   0x7   :  { %749 = vmatpush.bf16.msra.mxu1 %v1656_v3  ;;  %1675 = vmatpush.bf16.msra.mxu2 %v1656_v3  ;;  %v1216_v18 = vld [vmem:[%s2359_s0] sm:$0xf]  ;;  %v1615_v21 = vld [vmem:[%s2359_s0 + $0x104] sm:$0xf0]  ;;  %v1226_v23 = vld [vmem:[%s2359_s0 + $0x18] sm:$0xf0] }
   0x8   :  { %v1344_v20 = vld [vmem:[%s2359_s0 + $0x100] sm:$0xf]  ;;  %v1217_v24 = vor.u32 %v1583_v19, %v1216_v18  ;;  %v1229_v26 = vor.u32 %v1584_v22, %v1226_v23  ;;  %v1618_v27 = vld [vmem:[%s2359_s0 + $0x124] sm:$0xf]  ;;  %v1362_v28 = vld [vmem:[%s2359_s0 + $0x128] sm:$0xf0] }
   0x9   :  { %v1345_v25 = vor.u32 %v1615_v21, %v1344_v20  ;;  %v1365_v29 = vor.u32 %v1618_v27, %v1362_v28  ;;  %v1224_v30 = vld [vmem:[%s2359_s0 + $0x10] sm:$0xf]  ;;  %v1585_v31 = vld [vmem:[%s2359_s0 + $0x14] sm:$0xf0]  ;;  %v1586_v34 = vld [vmem:[%s2359_s0 + $0x24] sm:$0xf] }
   0xa   :  { %577 = vmatpush.bf16.msra.mxu0 %v1651_v4  ;;  %1668 = vmatpush.bf16.msra.mxu3 %v1651_v4  ;;  %v1352_v32 = vld [vmem:[%s2359_s0 + $0x110] sm:$0xf]  ;;  %v1617_v33 = vld [vmem:[%s2359_s0 + $0x114] sm:$0xf0]  ;;  %v1234_v35 = vld [vmem:[%s2359_s0 + $0x28] sm:$0xf0]  ;;  %v1225_v36 = vor.u32 %v1585_v31, %v1224_v30 }
   0xb   :  { %750 = vmatpush.bf16.msra.mxu1 %v1655_v5  ;;  %1676 = vmatpush.bf16.msra.mxu2 %v1655_v5  ;;  %v1353_v37 = vor.u32 %v1617_v33, %v1352_v32  ;;  %v1237_v38 = vor.u32 %v1586_v34, %v1234_v35  ;;  %v1620_v39 = vld [vmem:[%s2359_s0 + $0x134] sm:$0xf]  ;;  %v1370_v40 = vld [vmem:[%s2359_s0 + $0x138] sm:$0xf0]  ;;  %v1232_v42 = vld [vmem:[%s2359_s0 + $0x20] sm:$0xf] }
   0xc   :  { %v1373_v41 = vor.u32 %v1620_v39, %v1370_v40  ;;  %v1587_v43 = vld [vmem:[%s2359_s0 + $0x24] sm:$0xf0]  ;;  %v1360_v44 = vld [vmem:[%s2359_s0 + $0x120] sm:$0xf]  ;;  %v1588_v46 = vld [vmem:[%s2359_s0 + $0x34] sm:$0xf] }
   0xd   :  { %v1619_v45 = vld [vmem:[%s2359_s0 + $0x124] sm:$0xf0]  ;;  %v1242_v47 = vld [vmem:[%s2359_s0 + $0x38] sm:$0xf0]  ;;  %v1233_v48 = vor.u32 %v1587_v43, %v1232_v42  ;;  %v1622_v51 = vld [vmem:[%s2359_s0 + $0x144] sm:$0xf] }
   0xe   :  { %578 = vmatpush.bf16.msra.mxu0 %v1650_v6  ;;  %1669 = vmatpush.bf16.msra.mxu3 %v1650_v6  ;;  %v1361_v49 = vor.u32 %v1619_v45, %v1360_v44  ;;  %v1245_v50 = vor.u32 %v1588_v46, %v1242_v47  ;;  %v1378_v52 = vld [vmem:[%s2359_s0 + $0x148] sm:$0xf0]  ;;  %v1240_v54 = vld [vmem:[%s2359_s0 + $0x30] sm:$0xf]  ;;  %v1589_v55 = vld [vmem:[%s2359_s0 + $0x34] sm:$0xf0] }
   0xf   :  { %751 = vmatpush.bf16.msra.mxu1 %v1654_v7  ;;  %1677 = vmatpush.bf16.msra.mxu2 %v1654_v7  ;;  %v1381_v53 = vor.u32 %v1622_v51, %v1378_v52  ;;  %v1368_v56 = vld [vmem:[%s2359_s0 + $0x130] sm:$0xf]  ;;  %v1621_v57 = vld [vmem:[%s2359_s0 + $0x134] sm:$0xf0]  ;;  %v1590_v58 = vld [vmem:[%s2359_s0 + $0x44] sm:$0xf]  ;;  %v1241_v60 = vor.u32 %v1589_v55, %v1240_v54 }
  0x10   :  { %v1250_v59 = vld [vmem:[%s2359_s0 + $0x48] sm:$0xf0]  ;;  %v1369_v61 = vor.u32 %v1621_v57, %v1368_v56  ;;  %v1624_v63 = vld [vmem:[%s2359_s0 + $0x154] sm:$0xf]  ;;  %v1386_v0 = vld [vmem:[%s2359_s0 + $0x158] sm:$0xf0] }
  0x11   :  { %v1253_v62 = vor.u32 %v1590_v58, %v1250_v59  ;;  %v1389_v1 = vor.u32 %v1624_v63, %v1386_v0  ;;  %v1248_v2 = vld [vmem:[%s2359_s0 + $0x40] sm:$0xf]  ;;  %v1591_v3 = vld [vmem:[%s2359_s0 + $0x44] sm:$0xf0]  ;;  %v1592_v6 = vld [vmem:[%s2359_s0 + $0x54] sm:$0xf] }
  0x12   :  { %1518 = vmatmul.msk.bf16.vlgmr.msra.gmra.mxu1 %vm478_vm0, %v1221_v10  ;;  %579 = vmatpush.bf16.msra.mxu0 %v1649_v11  ;;  %v1376_v4 = vld [vmem:[%s2359_s0 + $0x140] sm:$0xf]  ;;  %v1623_v5 = vld [vmem:[%s2359_s0 + $0x144] sm:$0xf0]  ;;  %v1258_v7 = vld [vmem:[%s2359_s0 + $0x58] sm:$0xf0]  ;;  %v1249_v8 = vor.u32 %v1591_v3, %v1248_v2 }
  0x13   :  { %1670 = vmatpush.bf16.msra.mxu3 %v1649_v11  ;;  %1535 = vmatmul.msk.bf16.vlgmr.msra.gmra.mxu2 %vm478_vm0, %v1357_v14  ;;  %v1377_v9 = vor.u32 %v1623_v5, %v1376_v4  ;;  %v1261_v10 = vor.u32 %v1592_v6, %v1258_v7  ;;  %v1626_v11 = vld [vmem:[%s2359_s0 + $0x164] sm:$0xf]  ;;  %v1394_v12 = vld [vmem:[%s2359_s0 + $0x168] sm:$0xf0]  ;;  %v1256_v14 = vld [vmem:[%s2359_s0 + $0x50] sm:$0xf] }
  0x14   :  { %v1397_v13 = vor.u32 %v1626_v11, %v1394_v12  ;;  %v1594_v18 = vld [vmem:[%s2359_s0 + $0x64] sm:$0xf]  ;;  %v1266_v19 = vld [vmem:[%s2359_s0 + $0x68] sm:$0xf0]  ;;  %v1628_v23 = vld [vmem:[%s2359_s0 + $0x174] sm:$0xf] }
  0x15   :  { %v1269_v22 = vor.u32 %v1594_v18, %v1266_v19  ;;  %v1595_v27 = vld [vmem:[%s2359_s0 + $0x64] sm:$0xf0]  ;;  %v1392_v28 = vld [vmem:[%s2359_s0 + $0x160] sm:$0xf]  ;;  %v1596_v30 = vld [vmem:[%s2359_s0 + $0x74] sm:$0xf] }
  0x16   :  { %580 = vmatpush.bf16.msra.mxu0 %v1648_v15  ;;  %v1274_v31 = vld [vmem:[%s2359_s0 + $0x78] sm:$0xf0]  ;;  %v1630_v35 = vld [vmem:[%s2359_s0 + $0x184] sm:$0xf]  ;;  %v1597_v39 = vld [vmem:[%s2359_s0 + $0x74] sm:$0xf0] }
  0x17   :  { %1671 = vmatpush.bf16.msra.mxu3 %v1648_v15  ;;  %v1593_v15 = vld [vmem:[%s2359_s0 + $0x54] sm:$0xf0]  ;;  %v1277_v34 = vor.u32 %v1596_v30, %v1274_v31  ;;  %v1400_v40 = vld [vmem:[%s2359_s0 + $0x170] sm:$0xf]  ;;  %v1598_v42 = vld [vmem:[%s2359_s0 + $0x84] sm:$0xf] }
  0x18   :  { %v1257_v20 = vor.u32 %v1593_v15, %v1256_v14  ;;  %v1282_v43 = vld [vmem:[%s2359_s0 + $0x88] sm:$0xf0]  ;;  %v1280_v54 = vld [vmem:[%s2359_s0 + $0x80] sm:$0xf]  ;;  %v1599_v55 = vld [vmem:[%s2359_s0 + $0x84] sm:$0xf0] }
  0x19   :  { %v1285_v46 = vor.u32 %v1598_v42, %v1282_v43  ;;  %v1408_v56 = vld [vmem:[%s2359_s0 + $0x180] sm:$0xf]  ;;  %v1631_v57 = vld [vmem:[%s2359_s0 + $0x184] sm:$0xf0]  ;;  %v1600_v58 = vld [vmem:[%s2359_s0 + $0x94] sm:$0xf] }
  0x1a   :  { %581 = vmatpush.bf16.msra.mxu0 %v1647_v16  ;;  %v1290_v59 = vld [vmem:[%s2359_s0 + $0x98] sm:$0xf0]  ;;  %v1634_v4 = vld [vmem:[%s2359_s0 + $0x1a4] sm:$0xf]  ;;  %v1426_v5 = vld [vmem:[%s2359_s0 + $0x1a8] sm:$0xf0] }
  0x1b   :  { %1672 = vmatpush.bf16.msra.mxu3 %v1647_v16  ;;  %v1384_v16 = vld [vmem:[%s2359_s0 + $0x150] sm:$0xf]  ;;  %v1293_v63 = vor.u32 %v1600_v58, %v1290_v59  ;;  %v1429_v6 = vor.u32 %v1634_v4, %v1426_v5  ;;  %v1601_v14 = vld [vmem:[%s2359_s0 + $0x94] sm:$0xf0]  ;;  %v1602_v19 = vld [vmem:[%s2359_s0 + $0xa4] sm:$0xf] }
  0x1c   :  { %v1416_v15 = vld [vmem:[%s2359_s0 + $0x190] sm:$0xf]  ;;  %v1636_v31 = vld [vmem:[%s2359_s0 + $0x1b4] sm:$0xf] }
  0x1e   :  { %582 = vmatpush.bf16.msra.mxu0 %v1646_v17 }
  0x1f   :  { %1673 = vmatpush.bf16.msra.mxu3 %v1646_v17  ;;  %v1625_v17 = vld [vmem:[%s2359_s0 + $0x154] sm:$0xf0] }
  0x20   :  { %v1385_v21 = vor.u32 %v1625_v17, %v1384_v16  ;;  %v1633_v16 = vld [vmem:[%s2359_s0 + $0x194] sm:$0xf0] }
  0x21   :  { %583 = vmatmul.bf16.vlgmr.msra.gmra.mxu0 %v1217_v24  ;;  %v1402_v24 = vld [vmem:[%s2359_s0 + $0x178] sm:$0xf0] }
  0x22   :  { %663 = vmatmul.bf16.vlgmr.msra.gmra.mxu3 %v1345_v25  ;;  %1519 = vmatmul.msk.bf16.gmra.mxu1 %vm478_vm0, %v1229_v26  ;;  %v1405_v25 = vor.u32 %v1628_v23, %v1402_v24  ;;  %v1264_v26 = vld [vmem:[%s2359_s0 + $0x60] sm:$0xf] }
  0x23   :  { %1536 = vmatmul.msk.bf16.gmra.mxu2 %vm478_vm0, %v1365_v29  ;;  %v1627_v29 = vld [vmem:[%s2359_s0 + $0x164] sm:$0xf0]  ;;  %v1265_v32 = vor.u32 %v1595_v27, %v1264_v26 }
  0x24   :  { %v1393_v33 = vor.u32 %v1627_v29, %v1392_v28 }
  0x31   :  { %588 = vmatmul.bf16.gmra.mxu0 %v1225_v36  ;;  %v1410_v36 = vld [vmem:[%s2359_s0 + $0x188] sm:$0xf0] }
  0x32   :  { %668 = vmatmul.bf16.gmra.mxu3 %v1353_v37  ;;  %1520 = vmatmul.msk.bf16.gmra.mxu1 %vm478_vm0, %v1237_v38  ;;  %v1413_v37 = vor.u32 %v1630_v35, %v1410_v36  ;;  %v1272_v38 = vld [vmem:[%s2359_s0 + $0x70] sm:$0xf] }
  0x33   :  { %1537 = vmatmul.msk.bf16.gmra.mxu2 %vm478_vm0, %v1373_v41  ;;  %v1629_v41 = vld [vmem:[%s2359_s0 + $0x174] sm:$0xf0]  ;;  %v1273_v44 = vor.u32 %v1597_v39, %v1272_v38 }
  0x34   :  { %v1401_v45 = vor.u32 %v1629_v41, %v1400_v40 }
  0x41   :  { %593 = vmatmul.bf16.gmra.mxu0 %v1233_v48  ;;  %v1632_v48 = vld [vmem:[%s2359_s0 + $0x194] sm:$0xf] }
  0x42   :  { %673 = vmatmul.bf16.gmra.mxu3 %v1361_v49  ;;  %1521 = vmatmul.msk.bf16.gmra.mxu1 %vm478_vm0, %v1245_v50  ;;  %v1418_v49 = vld [vmem:[%s2359_s0 + $0x198] sm:$0xf0] }
  0x43   :  { %1538 = vmatmul.msk.bf16.gmra.mxu2 %vm478_vm0, %v1381_v53  ;;  %v1421_v50 = vor.u32 %v1632_v48, %v1418_v49  ;;  %v1976_v53 = vld [vmem:[%s2360_s2] ss:$0 sm:$0xff]  ;;  %v1635_v48 = vld [vmem:[%s2359_s0 + $0x1a4] sm:$0xf0] }
  0x51   :  { %598 = vmatmul.bf16.gmra.mxu0 %v1241_v60  ;;  %v1281_v60 = vor.u32 %v1599_v55, %v1280_v54 }
  0x52   :  { %678 = vmatmul.bf16.gmra.mxu3 %v1369_v61  ;;  %1522 = vmatmul.msk.bf16.gmra.mxu1 %vm478_vm0, %v1253_v62  ;;  %v1409_v62 = vor.u32 %v1631_v57, %v1408_v56 }
  0x53   :  { %1539 = vmatmul.msk.bf16.gmra.mxu2 %vm478_vm0, %v1389_v1 }
  0x61   :  { %603 = vmatmul.bf16.gmra.mxu0 %v1249_v8 }
  0x62   :  { %683 = vmatmul.bf16.gmra.mxu3 %v1377_v9  ;;  %1523 = vmatmul.msk.bf16.gmra.mxu1 %vm478_vm0, %v1261_v10 }
  0x63   :  { %1540 = vmatmul.msk.bf16.gmra.mxu2 %vm478_vm0, %v1397_v13  ;;  %v1288_v13 = vld [vmem:[%s2359_s0 + $0x90] sm:$0xf] }
  0x64   :  { %v1289_v23 = vor.u32 %v1601_v14, %v1288_v13 }
  0x71   :  { %608 = vmatmul.bf16.gmra.mxu0 %v1257_v20  ;;  %v1298_v20 = vld [vmem:[%s2359_s0 + $0xa8] sm:$0xf0] }
  0x72   :  { %688 = vmatmul.bf16.gmra.mxu3 %v1385_v21  ;;  %1524 = vmatmul.msk.bf16.gmra.mxu1 %vm478_vm0, %v1269_v22  ;;  %v1301_v26 = vor.u32 %v1602_v19, %v1298_v20  ;;  %v1637_v19 = vld [vmem:[%s2359_s0 + $0x1b4] sm:$0xf0] }
  0x73   :  { %1541 = vmatmul.msk.bf16.gmra.mxu2 %vm478_vm0, %v1405_v25  ;;  %v1417_v25 = vor.u32 %v1633_v16, %v1416_v15  ;;  %v1304_v16 = vld [vmem:[%s2359_s0 + $0xb0] sm:$0xf] }
  0x81   :  { %613 = vmatmul.bf16.gmra.mxu0 %v1265_v32  ;;  %v1434_v32 = vld [vmem:[%s2359_s0 + $0x1b8] sm:$0xf0] }
  0x82   :  { %693 = vmatmul.bf16.gmra.mxu3 %v1393_v33  ;;  %1525 = vmatmul.msk.bf16.gmra.mxu1 %vm478_vm0, %v1277_v34  ;;  %v1665_v33 = vld [vmem:[%s2361_s3 + $0x38] sm:$0xff]  ;;  %v1437_v34 = vor.u32 %v1636_v31, %v1434_v32 }
  0x83   :  { %1542 = vmatmul.msk.bf16.gmra.mxu2 %vm478_vm0, %v1413_v37 }
  0x84   :  { %1181 = vmatpush.bf16.msrb.mxu2 %v1665_v33 }
  0x8f   :  { %v753_v47 = vpop.f32.mrf.mxu1 }
  0x91   :  { %618 = vmatmul.bf16.gmra.mxu0 %v1273_v44 }
  0x92   :  { %698 = vmatmul.bf16.gmra.mxu3 %v1401_v45  ;;  %1526 = vmatmul.msk.bf16.gmra.mxu1 %vm478_vm0, %v1285_v46  ;;  %v1296_v45 = vld [vmem:[%s2359_s0 + $0xa0] sm:$0xf]  ;;  %v1603_v46 = vld [vmem:[%s2359_s0 + $0xa4] sm:$0xf0] }
  0x93   :  { %1543 = vmatmul.msk.bf16.gmra.mxu2 %vm478_vm0, %v1421_v50  ;;  %v1604_v50 = vld [vmem:[%s2359_s0 + $0xb4] sm:$0xf]  ;;  %v1297_v55 = vor.u32 %v1603_v46, %v1296_v45 }
  0x96   :  { %v1971_v51 = vpop.f32.mrf.mxu2 }
  0x97   :  { %v755_v52 = vpop.f32.mrf.mxu1 }
  0x9e   :  { %v584_v61 = vpop.f32.mrf.mxu0  ;;  %v1996_v0 = vpop.f32.mrf.mxu2 }
  0x9f   :  { %v585_v1 = vadd.f32 %v1976_v53, %v584_v61  ;;  %v758_v2 = vpop.f32.mrf.mxu1 }
  0xa1   :  { %v754_v3 = vadd.f32 %v753_v47, %v585_v1  ;;  %623 = vmatmul.bf16.gmra.mxu0 %v1281_v60  ;;  %v1424_v47 = vld [vmem:[%s2359_s0 + $0x1a0] sm:$0xf] }
  0xa2   :  { %703 = vmatmul.bf16.gmra.mxu3 %v1409_v62  ;;  %1527 = vmatmul.msk.bf16.gmra.mxu1 %vm478_vm0, %v1293_v63  ;;  %v1425_v58 = vor.u32 %v1635_v48, %v1424_v47 }
  0xa3   :  { %1544 = vmatmul.msk.bf16.gmra.mxu2 %vm478_vm0, %v1429_v6  ;;  %v913_v17 = vmax.f32 %v754_v3, 0.0  ;;  %v1442_v3 = vld [vmem:[%s2359_s0 + $0x1c8] sm:$0xf0] }
  0xa5   :  { %v2007_v7 = vpop.f32.mrf.mxu3 }
  0xa6   :  { %v586_v8 = vpop.f32.mrf.mxu0  ;;  %v2009_v9 = vpop.f32.mrf.mxu2 }
  0xa7   :  { %v587_v10 = vadd.f32 %v1976_v53, %v586_v8  ;;  %v760_v11 = vpop.f32.mrf.mxu1 }
  0xa9   :  { %v756_v12 = vadd.f32 %v755_v52, %v587_v10 }
  0xab   :  { %v914_v18 = vmax.f32 %v756_v12, 0.0 }
  0xad   :  { %v978_v21 = vadd.f32 %v914_v18, %v913_v17  ;;  %v2030_v22 = vpop.f32.mrf.mxu3  ;;  %v1605_v17 = vld [vmem:[%s2359_s0 + $0xb4] sm:$0xf0]  ;;  %v1432_v18 = vld [vmem:[%s2359_s0 + $0x1b0] sm:$0xf] }
  0xae   :  { %v589_v24 = vpop.f32.mrf.mxu0  ;;  %v2032_v27 = vpop.f32.mrf.mxu2 }
  0xaf   :  { %v590_v28 = vadd.f32 %v1976_v53, %v589_v24  ;;  %v763_v29 = vpop.f32.mrf.mxu1 }
  0xb1   :  { %v759_v30 = vadd.f32 %v758_v2, %v590_v28  ;;  %628 = vmatmul.bf16.gmra.mxu0 %v1289_v23  ;;  %v1638_v2 = vld [vmem:[%s2359_s0 + $0x1c4] sm:$0xf] }
  0xb2   :  { %708 = vmatmul.bf16.gmra.mxu3 %v1417_v25  ;;  %1528 = vmatmul.msk.bf16.gmra.mxu1 %vm478_vm0, %v1301_v26  ;;  %v1445_v4 = vor.u32 %v1638_v2, %v1442_v3  ;;  %v1305_v25 = vor.u32 %v1605_v17, %v1304_v16  ;;  %v1664_v26 = vld [vmem:[%s2361_s3 + $0x30] sm:$0xff] }
  0xb3   :  { %v915_v35 = vmax.f32 %v759_v30, 0.0  ;;  %1545 = vmatmul.msk.bf16.gmra.mxu2 %vm478_vm0, %v1437_v34  ;;  %v1433_v30 = vor.u32 %v1637_v19, %v1432_v18 }
  0xb4   :  { %1182 = vmatpush.bf16.msrb.mxu2 %v1664_v26 }
  0xb5   :  { %v979_v36 = vadd.f32 %v978_v21, %v915_v35  ;;  %v669_v37 = vpop.f32.mrf.mxu3  ;;  %v1314_v21 = vld [vmem:[%s2359_s0 + $0xc8] sm:$0xf0] }
  0xb6   :  { %v670_v38 = vadd.f32 %v1976_v53, %v669_v37  ;;  %v591_v39 = vpop.f32.mrf.mxu0  ;;  %v2047_v40 = vpop.f32.mrf.mxu2  ;;  %v1640_v37 = vld [vmem:[%s2359_s0 + $0x1d4] sm:$0xf] }
  0xb7   :  { %v592_v41 = vadd.f32 %v1976_v53, %v591_v39  ;;  %v765_v42 = vpop.f32.mrf.mxu1 }
  0xb8   :  { %v2051_v43 = vadd.f32 %v1971_v51, %v670_v38  ;;  %v1306_v51 = vld [vmem:[%s2359_s0 + $0xb8] sm:$0xf0] }
  0xb9   :  { %v761_v44 = vadd.f32 %v760_v11, %v592_v41  ;;  %v1309_v59 = vor.u32 %v1604_v50, %v1306_v51  ;;  %v1450_v38 = vld [vmem:[%s2359_s0 + $0x1d8] sm:$0xf0]  ;;  %v1312_v51 = vld [vmem:[%s2359_s0 + $0xc0] sm:$0xf] }
  0xba   :  { %v1453_v39 = vor.u32 %v1640_v37, %v1450_v38 }
  0xbb   :  { %v916_v49 = vmax.f32 %v761_v44, 0.0 }
  0xbd   :  { %v980_v52 = vadd.f32 %v979_v36, %v916_v49  ;;  %v671_v54 = vpop.f32.mrf.mxu3 }
  0xbe   :  { %v672_v56 = vadd.f32 %v1976_v53, %v671_v54  ;;  %v594_v57 = vpop.f32.mrf.mxu0  ;;  %v2072_v60 = vpop.f32.mrf.mxu2  ;;  %v1440_v54 = vld [vmem:[%s2359_s0 + $0x1c0] sm:$0xf] }
  0xbf   :  { %v595_v61 = vadd.f32 %v1976_v53, %v594_v57  ;;  %v768_v62 = vpop.f32.mrf.mxu1  ;;  %v1322_v57 = vld [vmem:[%s2359_s0 + $0xd8] sm:$0xf0] }
  0xc0   :  { %v2076_v63 = vadd.f32 %v1996_v0, %v672_v56 }
  0xc1   :  { %v764_v1 = vadd.f32 %v763_v29, %v595_v61  ;;  %633 = vmatmul.bf16.gmra.mxu0 %v1297_v55  ;;  %v1639_v55 = vld [vmem:[%s2359_s0 + $0x1c4] sm:$0xf0] }
  0xc2   :  { %713 = vmatmul.bf16.gmra.mxu3 %v1425_v58  ;;  %1529 = vmatmul.msk.bf16.gmra.mxu1 %vm478_vm0, %v1309_v59  ;;  %v1441_v2 = vor.u32 %v1639_v55, %v1440_v54 }
  0xc3   :  { %v917_v5 = vmax.f32 %v764_v1, 0.0  ;;  %1546 = vmatmul.msk.bf16.gmra.mxu2 %vm478_vm0, %v1445_v4 }
  0xc5   :  { %v981_v6 = vadd.f32 %v980_v52, %v917_v5  ;;  %v674_v8 = vpop.f32.mrf.mxu3  ;;  %v1607_v52 = vld [vmem:[%s2359_s0 + $0xc4] sm:$0xf0] }
  0xc6   :  { %v675_v0 = vadd.f32 %v1976_v53, %v674_v8  ;;  %v596_v10 = vpop.f32.mrf.mxu0  ;;  %v2087_v11 = vpop.f32.mrf.mxu2  ;;  %v1313_v61 = vor.u32 %v1607_v52, %v1312_v51 }
  0xc7   :  { %v597_v12 = vadd.f32 %v1976_v53, %v596_v10  ;;  %v770_v13 = vpop.f32.mrf.mxu1  ;;  %v1642_v10 = vld [vmem:[%s2359_s0 + $0x1e4] sm:$0xf] }
  0xc8   :  { %v2091_v14 = vadd.f32 %v2009_v9, %v675_v0  ;;  %v1606_v9 = vld [vmem:[%s2359_s0 + $0xc4] sm:$0xf] }
  0xc9   :  { %v766_v15 = vadd.f32 %v765_v42, %v597_v12  ;;  %v1317_v31 = vor.u32 %v1606_v9, %v1314_v21  ;;  %v1458_v12 = vld [vmem:[%s2359_s0 + $0x1e8] sm:$0xf0]  ;;  %v1320_v21 = vld [vmem:[%s2359_s0 + $0xd0] sm:$0xf] }
  0xcb   :  { %v918_v20 = vmax.f32 %v766_v15, 0.0 }
  0xcd   :  { %v982_v23 = vadd.f32 %v981_v6, %v918_v20  ;;  %v676_v24 = vpop.f32.mrf.mxu3 }
  0xce   :  { %v677_v28 = vadd.f32 %v1976_v53, %v676_v24  ;;  %v599_v29 = vpop.f32.mrf.mxu0  ;;  %v2115_v32 = vpop.f32.mrf.mxu2  ;;  %v1448_v24 = vld [vmem:[%s2359_s0 + $0x1d0] sm:$0xf] }
  0xcf   :  { %v600_v33 = vadd.f32 %v1976_v53, %v599_v29  ;;  %v773_v34 = vpop.f32.mrf.mxu1  ;;  %v1330_v29 = vld [vmem:[%s2359_s0 + $0xe8] sm:$0xf0] }
  0xd0   :  { %v2119_v35 = vadd.f32 %v2032_v27, %v677_v28 }
  0xd1   :  { %v769_v36 = vadd.f32 %v768_v62, %v600_v33  ;;  %638 = vmatmul.bf16.gmra.mxu0 %v1305_v25  ;;  %v1641_v25 = vld [vmem:[%s2359_s0 + $0x1d4] sm:$0xf0] }
  0xd2   :  { %718 = vmatmul.bf16.gmra.mxu3 %v1433_v30  ;;  %1530 = vmatmul.msk.bf16.gmra.mxu1 %vm478_vm0, %v1317_v31  ;;  %v1449_v38 = vor.u32 %v1641_v25, %v1448_v24 }
  0xd3   :  { %v919_v41 = vmax.f32 %v769_v36, 0.0  ;;  %1547 = vmatmul.msk.bf16.gmra.mxu2 %vm478_vm0, %v1453_v39 }
  0xd5   :  { %v983_v42 = vadd.f32 %v982_v23, %v919_v41  ;;  %v679_v44 = vpop.f32.mrf.mxu3  ;;  %v1609_v23 = vld [vmem:[%s2359_s0 + $0xd4] sm:$0xf0] }
  0xd6   :  { %v680_v27 = vadd.f32 %v1976_v53, %v679_v44  ;;  %v601_v45 = vpop.f32.mrf.mxu0  ;;  %v2130_v46 = vpop.f32.mrf.mxu2  ;;  %v1321_v33 = vor.u32 %v1609_v23, %v1320_v21 }
  0xd7   :  { %v602_v47 = vadd.f32 %v1976_v53, %v601_v45  ;;  %v775_v48 = vpop.f32.mrf.mxu1 }
  0xd8   :  { %v2134_v49 = vadd.f32 %v2047_v40, %v680_v27  ;;  %v1608_v40 = vld [vmem:[%s2359_s0 + $0xd4] sm:$0xf] }
  0xd9   :  { %v771_v50 = vadd.f32 %v770_v13, %v602_v47  ;;  %v1325_v3 = vor.u32 %v1608_v40, %v1322_v57  ;;  %v1461_v13 = vor.u32 %v1642_v10, %v1458_v12  ;;  %v1643_v10 = vld [vmem:[%s2359_s0 + $0x1e4] sm:$0xf0] }
  0xdb   :  { %v920_v56 = vmax.f32 %v771_v50, 0.0  ;;  %v1466_v50 = vld [vmem:[%s2359_s0 + $0x1f8] sm:$0xf0] }
  0xdd   :  { %v2154_v58 = vadd.f32 %v983_v42, %v920_v56  ;;  %v681_v59 = vpop.f32.mrf.mxu3 }
  0xde   :  { %v682_v62 = vadd.f32 %v1976_v53, %v681_v59  ;;  %v604_v1 = vpop.f32.mrf.mxu0  ;;  %v2157_v4 = vpop.f32.mrf.mxu2 }
  0xdf   :  { %v605_v5 = vadd.f32 %v1976_v53, %v604_v1  ;;  %v778_v6 = vpop.f32.mrf.mxu1 }
  0xe0   :  { %v2161_v8 = vadd.f32 %v2072_v60, %v682_v62 }
  0xe1   :  { %v774_v0 = vadd.f32 %v773_v34, %v605_v5  ;;  %643 = vmatmul.bf16.gmra.mxu0 %v1313_v61  ;;  %v1663_v34 = vld [vmem:[%s2361_s3 + $0x28] sm:$0xff] }
  0xe2   :  { %723 = vmatmul.bf16.gmra.mxu3 %v1441_v2  ;;  %1531 = vmatmul.msk.bf16.gmra.mxu1 %vm478_vm0, %v1325_v3  ;;  %v1328_v3 = vld [vmem:[%s2359_s0 + $0xe0] sm:$0xf]  ;;  %v1611_v5 = vld [vmem:[%s2359_s0 + $0xe4] sm:$0xf0] }
  0xe3   :  { %1548 = vmatmul.msk.bf16.gmra.mxu2 %vm478_vm0, %v1461_v13  ;;  %v921_v26 = vmax.f32 %v774_v0, 0.0  ;;  %v1456_v0 = vld [vmem:[%s2359_s0 + $0x1e0] sm:$0xf]  ;;  %v1338_v13 = vld [vmem:[%s2359_s0 + $0xf8] sm:$0xf0] }
  0xe4   :  { %1183 = vmatpush.bf16.msrb.mxu2 %v1663_v34 }
  0xe5   :  { %v684_v15 = vpop.f32.mrf.mxu3 }
  0xe6   :  { %v685_v60 = vadd.f32 %v1976_v53, %v684_v15  ;;  %v606_v16 = vpop.f32.mrf.mxu0  ;;  %v2172_v17 = vpop.f32.mrf.mxu2 }
  0xe7   :  { %v607_v18 = vadd.f32 %v1976_v53, %v606_v16  ;;  %v780_v19 = vpop.f32.mrf.mxu1 }
  0xe8   :  { %v854_v20 = vadd.f32 %v2087_v11, %v685_v60  ;;  %v1610_v11 = vld [vmem:[%s2359_s0 + $0xe4] sm:$0xf] }
  0xe9   :  { %v776_v9 = vadd.f32 %v775_v48, %v607_v18  ;;  %v1333_v39 = vor.u32 %v1610_v11, %v1330_v29  ;;  %v1644_v48 = vld [vmem:[%s2359_s0 + $0x1f4] sm:$0xf]  ;;  %v1329_v18 = vor.u32 %v1611_v5, %v1328_v3  ;;  %v1662_v3 = vld [vmem:[%s2361_s3 + $0x20] sm:$0xff] }
  0xea   :  { %v953_v27 = vmax.f32 %v854_v20, 0.0  ;;  %v1469_v52 = vor.u32 %v1644_v48, %v1466_v50  ;;  %v1645_v48 = vld [vmem:[%s2359_s0 + $0x1f4] sm:$0xf0]  ;;  %1184 = vmatpush.bf16.msrb.mxu2 %v1662_v3 }
  0xeb   :  { %v922_v28 = vmax.f32 %v776_v9, 0.0  ;;  %v1457_v9 = vor.u32 %v1643_v10, %v1456_v0 }
  0xed   :  { %v991_v30 = vadd.f32 %v922_v28, %v921_v26  ;;  %v686_v31 = vpop.f32.mrf.mxu3 }
  0xee   :  { %v687_v36 = vadd.f32 %v1976_v53, %v686_v31  ;;  %v609_v37 = vpop.f32.mrf.mxu0  ;;  %v2198_v41 = vpop.f32.mrf.mxu2 }
  0xef   :  { %v610_v42 = vadd.f32 %v1976_v53, %v609_v37  ;;  %v783_v44 = vpop.f32.mrf.mxu1 }
  0xf0   :  { %v856_v45 = vadd.f32 %v2115_v32, %v687_v36 }
  0xf1   :  { %v779_v47 = vadd.f32 %v778_v6, %v610_v42  ;;  %648 = vmatmul.bf16.gmra.mxu0 %v1321_v33 }
  0xf2   :  { %v954_v51 = vmax.f32 %v856_v45, 0.0  ;;  %728 = vmatmul.bf16.gmra.mxu3 %v1449_v38  ;;  %1532 = vmatmul.msk.bf16.gmra.mxu1 %vm478_vm0, %v1333_v39 }
  0xf3   :  { %v923_v54 = vmax.f32 %v779_v47, 0.0  ;;  %1549 = vmatmul.msk.bf16.gmra.mxu2 %vm478_vm0, %v1469_v52  ;;  %v1464_v47 = vld [vmem:[%s2359_s0 + $0x1f0] sm:$0xf] }
  0xf4   :  { %v1043_v55 = vadd.f32 %v954_v51, %v953_v27  ;;  %v1613_v27 = vld [vmem:[%s2359_s0 + $0xf4] sm:$0xf0]  ;;  %v1346_v51 = vld [vmem:[%s2359_s0 + $0x108] sm:$0xf0] }
  0xf5   :  { %v992_v56 = vadd.f32 %v991_v30, %v923_v54  ;;  %v689_v40 = vpop.f32.mrf.mxu3 }
  0xf6   :  { %v690_v32 = vadd.f32 %v1976_v53, %v689_v40  ;;  %v611_v57 = vpop.f32.mrf.mxu0  ;;  %v2212_v62 = vpop.f32.mrf.mxu2 }
  0xf7   :  { %v612_v59 = vadd.f32 %v1976_v53, %v611_v57  ;;  %v785_v61 = vpop.f32.mrf.mxu1  ;;  %v1465_v57 = vor.u32 %v1645_v48, %v1464_v47 }
  0xf8   :  { %v859_v1 = vadd.f32 %v2130_v46, %v690_v32  ;;  %v1612_v46 = vld [vmem:[%s2359_s0 + $0xf4] sm:$0xf] }
  0xf9   :  { %v781_v2 = vadd.f32 %v780_v19, %v612_v59  ;;  %v1341_v21 = vor.u32 %v1612_v46, %v1338_v13  ;;  %v985_v46 = vrot.slane %v2154_v58, 4 }
  0xfa   :  { %v955_v6 = vmax.f32 %v859_v1, 0.0 }
  0xfb   :  { %v924_v12 = vmax.f32 %v781_v2, 0.0 }
  0xfc   :  { %v1044_v15 = vadd.f32 %v1043_v55, %v955_v6 }
  0xfd   :  { %v993_v60 = vadd.f32 %v992_v56, %v924_v12  ;;  %v691_v16 = vpop.f32.mrf.mxu3 }
  0xfe   :  { %v692_v19 = vadd.f32 %v1976_v53, %v691_v16  ;;  %v614_v20 = vpop.f32.mrf.mxu0  ;;  %v2235_v25 = vpop.f32.mrf.mxu2 }
  0xff   :  { %v615_v23 = vadd.f32 %v1976_v53, %v614_v20  ;;  %v788_v24 = vpop.f32.mrf.mxu1  ;;  %v986_v20 = vadd.f32 %v985_v46, %v2154_v58 }
 0x100   :  { %v861_v26 = vadd.f32 %v2157_v4, %v692_v19 }
 0x101   :  { %v784_v28 = vadd.f32 %v783_v44, %v615_v23  ;;  %653 = vmatmul.bf16.gmra.mxu0 %v1329_v18  ;;  %v1336_v44 = vld [vmem:[%s2359_s0 + $0xf0] sm:$0xf] }
 0x102   :  { %v956_v11 = vmax.f32 %v861_v26, 0.0  ;;  %733 = vmatmul.bf16.gmra.mxu3 %v1457_v9  ;;  %1533 = vmatmul.msk.bf16.gmra.mxu1 %vm478_vm0, %v1341_v21  ;;  %v1337_v56 = vor.u32 %v1613_v27, %v1336_v44 }
 0x103   :  { %v925_v29 = vmax.f32 %v784_v28, 0.0  ;;  %v987_v28 = vrot.slane %v986_v20, 2 }
 0x104   :  { %v1045_v30 = vadd.f32 %v1044_v15, %v956_v11 }
 0x105   :  { %v994_v31 = vadd.f32 %v993_v60, %v925_v29  ;;  %v694_v33 = vpop.f32.mrf.mxu3 }
 0x106   :  { %v695_v34 = vadd.f32 %v1976_v53, %v694_v33  ;;  %v616_v36 = vpop.f32.mrf.mxu0  ;;  %v2241_v39 = vpop.f32.mrf.mxu2 }
 0x107   :  { %v617_v37 = vadd.f32 %v1976_v53, %v616_v36  ;;  %v790_v38 = vpop.f32.mrf.mxu1 }
 0x108   :  { %v864_v4 = vadd.f32 %v2172_v17, %v695_v34  ;;  %v1614_v17 = vld [vmem:[%s2359_s0 + $0x104] sm:$0xf] }
 0x109   :  { %v786_v42 = vadd.f32 %v785_v61, %v617_v37  ;;  %v1349_v59 = vor.u32 %v1614_v17, %v1346_v51 }
 0x10a   :  { %v957_v45 = vmax.f32 %v864_v4, 0.0 }
 0x10b   :  { %v926_v50 = vmax.f32 %v786_v42, 0.0 }
 0x10c   :  { %v1046_v52 = vadd.f32 %v1045_v30, %v957_v45 }
 0x10d   :  { %v995_v54 = vadd.f32 %v994_v31, %v926_v50  ;;  %v696_v55 = vpop.f32.mrf.mxu3 }
 0x10e   :  { %v697_v40 = vadd.f32 %v1976_v53, %v696_v55  ;;  %v619_v32 = vpop.f32.mrf.mxu0  ;;  %v2268_v6 = vpop.f32.mrf.mxu2 }
 0x10f   :  { %v620_v61 = vadd.f32 %v1976_v53, %v619_v32  ;;  %v793_v1 = vpop.f32.mrf.mxu1 }
 0x110   :  { %v866_v2 = vadd.f32 %v2198_v41, %v697_v40 }
 0x111   :  { %v789_v5 = vadd.f32 %v788_v24, %v620_v61  ;;  %658 = vmatmul.bf16.gmra.mxu0 %v1337_v56  ;;  %v1661_v61 = vld [vmem:[%s2361_s3 + $0x18] sm:$0xff] }
 0x112   :  { %v958_v0 = vmax.f32 %v866_v2, 0.0  ;;  %738 = vmatmul.bf16.gmra.mxu3 %v1465_v57  ;;  %1534 = vmatmul.msk.bf16.gmra.mxu1 %vm478_vm0, %v1349_v59 }
 0x113   :  { %v927_v10 = vmax.f32 %v789_v5, 0.0  ;;  %1185 = vmatpush.bf16.msrb.mxu2 %v1661_v61 }
 0x114   :  { %v1047_v12 = vadd.f32 %v1046_v52, %v958_v0 }
 0x115   :  { %v996_v13 = vadd.f32 %v995_v54, %v927_v10  ;;  %v699_v15 = vpop.f32.mrf.mxu3 }
 0x116   :  { %v700_v41 = vadd.f32 %v1976_v53, %v699_v15  ;;  %v621_v60 = vpop.f32.mrf.mxu0  ;;  %v878_v24 = vpop.f32.mrf.mxu2 }
 0x117   :  { %v622_v16 = vadd.f32 %v1976_v53, %v621_v60  ;;  %v795_v18 = vpop.f32.mrf.mxu1 }
 0x118   :  { %v869_v19 = vadd.f32 %v2212_v62, %v700_v41  ;;  %v988_v62 = vadd.f32 %v987_v28, %v986_v20 }
 0x119   :  { %v791_v9 = vadd.f32 %v790_v38, %v622_v16 }
 0x11a   :  { %v959_v21 = vmax.f32 %v869_v19, 0.0  ;;  %v989_v27 = vrot.slane %v988_v62, 1 }
 0x11b   :  { %v928_v23 = vmax.f32 %v791_v9, 0.0 }
 0x11c   :  { %v1048_v26 = vadd.f32 %v1047_v12, %v959_v21  ;;  %v990_v55 = vadd.f32 %v989_v27, %v988_v62 }
 0x11d   :  { %v997_v11 = vadd.f32 %v996_v13, %v928_v23  ;;  %v701_v29 = vpop.f32.mrf.mxu3 }
 0x11e   :  { %v702_v30 = vadd.f32 %v1976_v53, %v701_v29  ;;  %v624_v31 = vpop.f32.mrf.mxu0  ;;  %v880_v48 = vpop.f32.mrf.mxu2 }
 0x11f   :  { %v998_v33 = vrot.slane %v997_v11, 4  ;;  %v625_v34 = vadd.f32 %v1976_v53, %v624_v31  ;;  %v798_v36 = vpop.f32.mrf.mxu1 }
 0x120   :  { %v871_v37 = vadd.f32 %v2235_v25, %v702_v30 }
 0x121   :  { %v999_v4 = vadd.f32 %v998_v33, %v997_v11  ;;  %v794_v58 = vadd.f32 %v793_v1, %v625_v34 }
 0x122   :  { %v960_v38 = vmax.f32 %v871_v37, 0.0 }
 0x123   :  { %v1000_v42 = vrot.slane %v999_v4, 2  ;;  %v929_v57 = vmax.f32 %v794_v58, 0.0 }
 0x124   :  { %v2279_v44 = vadd.f32 %v1048_v26, %v960_v38 }
 0x125   :  { %v1001_v45 = vadd.f32 %v1000_v42, %v999_v4  ;;  %v704_v47 = vpop.f32.mrf.mxu3 }
 0x126   :  { %v705_v50 = vadd.f32 %v1976_v53, %v704_v47  ;;  %v626_v17 = vpop.f32.mrf.mxu0  ;;  %v883_v10 = vpop.f32.mrf.mxu2 }
 0x127   :  { %v1002_v51 = vrot.slane %v1001_v45, 1  ;;  %v627_v52 = vadd.f32 %v1976_v53, %v626_v17  ;;  %v800_v54 = vpop.f32.mrf.mxu1 }
 0x128   :  { %v874_v25 = vadd.f32 %v2241_v39, %v705_v50 }
 0x129   :  { %v1003_v56 = vadd.f32 %v1002_v51, %v1001_v45  ;;  %v796_v40 = vadd.f32 %v795_v18, %v627_v52 }
 0x12a   :  { %v961_v12 = vmax.f32 %v874_v25, 0.0 }
 0x12b   :  { %v2284_v32 = vsel %vm1090_vm1, %v1003_v56, %v990_v55  ;;  %v930_v59 = vmax.f32 %v796_v40, 0.0 }
 0x12d   :  { %v1004_v1 = vadd.f32 %v930_v59, %v929_v57  ;;  %v706_v2 = vpop.f32.mrf.mxu3 }
 0x12e   :  { %v707_v3 = vadd.f32 %v1976_v53, %v706_v2  ;;  %v629_v5 = vpop.f32.mrf.mxu0  ;;  %v885_v28 = vpop.f32.mrf.mxu2 }
 0x12f   :  { %v630_v0 = vadd.f32 %v1976_v53, %v629_v5  ;;  %v803_v39 = vpop.f32.mrf.mxu1  ;;  %v1660_v5 = vld [vmem:[%s2361_s3 + $0x10] sm:$0xff] }
 0x130   :  { %v876_v46 = vadd.f32 %v2268_v6, %v707_v3  ;;  %1186 = vmatpush.bf16.msrb.mxu2 %v1660_v5 }
 0x131   :  { %v799_v13 = vadd.f32 %v798_v36, %v630_v0 }
 0x132   :  { %v962_v15 = vmax.f32 %v876_v46, 0.0 }
 0x133   :  { %v931_v41 = vmax.f32 %v799_v13, 0.0 }
 0x134   :  { %v1056_v60 = vadd.f32 %v962_v15, %v961_v12 }
 0x135   :  { %v1005_v16 = vadd.f32 %v1004_v1, %v931_v41  ;;  %v709_v18 = vpop.f32.mrf.mxu3 }
 0x136   :  { %v710_v19 = vadd.f32 %v1976_v53, %v709_v18  ;;  %v631_v20 = vpop.f32.mrf.mxu0  ;;  %v888_v42 = vpop.f32.mrf.mxu2 }
 0x137   :  { %v632_v9 = vadd.f32 %v1976_v53, %v631_v20  ;;  %v805_v21 = vpop.f32.mrf.mxu1 }
 0x138   :  { %v879_v23 = vadd.f32 %v878_v24, %v710_v19 }
 0x139   :  { %v801_v26 = vadd.f32 %v800_v54, %v632_v9 }
 0x13a   :  { %v963_v11 = vmax.f32 %v879_v23, 0.0 }
 0x13b   :  { %v932_v29 = vmax.f32 %v801_v26, 0.0 }
 0x13c   :  { %v1057_v30 = vadd.f32 %v1056_v60, %v963_v11 }
 0x13d   :  { %v1006_v31 = vadd.f32 %v1005_v16, %v932_v29  ;;  %v711_v6 = vpop.f32.mrf.mxu3 }
 0x13e   :  { %v712_v33 = vadd.f32 %v1976_v53, %v711_v6  ;;  %v634_v34 = vpop.f32.mrf.mxu0  ;;  %v2298_v57 = vpop.f32.mrf.mxu2 }
 0x13f   :  { %v635_v36 = vadd.f32 %v1976_v53, %v634_v34  ;;  %v808_v37 = vpop.f32.mrf.mxu1 }
 0x140   :  { %v881_v62 = vadd.f32 %v880_v48, %v712_v33 }
 0x141   :  { %v804_v4 = vadd.f32 %v803_v39, %v635_v36 }
 0x142   :  { %v964_v58 = vmax.f32 %v881_v62, 0.0 }
 0x143   :  { %v933_v38 = vmax.f32 %v804_v4, 0.0 }
 0x144   :  { %v1058_v27 = vadd.f32 %v1057_v30, %v964_v58 }
 0x145   :  { %v1007_v24 = vadd.f32 %v1006_v31, %v933_v38  ;;  %v714_v45 = vpop.f32.mrf.mxu3 }
 0x146   :  { %v715_v47 = vadd.f32 %v1976_v53, %v714_v45  ;;  %v636_v50 = vpop.f32.mrf.mxu0  ;;  %v893_v18 = vpop.f32.mrf.mxu2 }
 0x147   :  { %v637_v17 = vadd.f32 %v1976_v53, %v636_v50  ;;  %v810_v51 = vpop.f32.mrf.mxu1 }
 0x148   :  { %v884_v52 = vadd.f32 %v883_v10, %v715_v47 }
 0x149   :  { %v806_v54 = vadd.f32 %v805_v21, %v637_v17 }
 0x14a   :  { %v965_v25 = vmax.f32 %v884_v52, 0.0 }
 0x14b   :  { %v934_v55 = vmax.f32 %v806_v54, 0.0 }
 0x14c   :  { %v1059_v56 = vadd.f32 %v1058_v27, %v965_v25 }
 0x14d   :  { %v1008_v40 = vadd.f32 %v1007_v24, %v934_v55  ;;  %v716_v48 = vpop.f32.mrf.mxu3 }
 0x14e   :  { %v717_v59 = vadd.f32 %v1976_v53, %v716_v48  ;;  %v639_v61 = vpop.f32.mrf.mxu0  ;;  %v895_v6 = vpop.f32.mrf.mxu2 }
 0x14f   :  { %v640_v1 = vadd.f32 %v1976_v53, %v639_v61  ;;  %v813_v2 = vpop.f32.mrf.mxu1 }
 0x150   :  { %v886_v3 = vadd.f32 %v885_v28, %v717_v59 }
 0x151   :  { %v809_v0 = vadd.f32 %v808_v37, %v640_v1  ;;  %v1659_v37 = vld [vmem:[%s2361_s3 + $0x8] sm:$0xff] }
 0x152   :  { %v966_v39 = vmax.f32 %v886_v3, 0.0  ;;  %1187 = vmatpush.bf16.msrb.mxu2 %v1659_v37 }
 0x153   :  { %v935_v10 = vmax.f32 %v809_v0, 0.0 }
 0x154   :  { %v1060_v12 = vadd.f32 %v1059_v56, %v966_v39 }
 0x155   :  { %v1009_v46 = vadd.f32 %v1008_v40, %v935_v10  ;;  %v719_v13 = vpop.f32.mrf.mxu3 }
 0x156   :  { %v720_v15 = vadd.f32 %v1976_v53, %v719_v13  ;;  %v641_v41 = vpop.f32.mrf.mxu0  ;;  %v898_v27 = vpop.f32.mrf.mxu2 }
 0x157   :  { %v642_v60 = vadd.f32 %v1976_v53, %v641_v41  ;;  %v815_v16 = vpop.f32.mrf.mxu1 }
 0x158   :  { %v889_v19 = vadd.f32 %v888_v42, %v720_v15 }
 0x159   :  { %v811_v20 = vadd.f32 %v810_v51, %v642_v60 }
 0x15a   :  { %v967_v9 = vmax.f32 %v889_v19, 0.0 }
 0x15b   :  { %v936_v21 = vmax.f32 %v811_v20, 0.0 }
 0x15c   :  { %v2307_v23 = vadd.f32 %v1060_v12, %v967_v9 }
 0x15d   :  { %v1010_v26 = vadd.f32 %v1009_v46, %v936_v21  ;;  %v721_v28 = vpop.f32.mrf.mxu3 }
 0x15e   :  { %v644_v11 = vpop.f32.mrf.mxu0  ;;  %v900_v17 = vpop.f32.mrf.mxu2 }
 0x15f   :  { %v1011_v29 = vrot.slane %v1010_v26, 4  ;;  %v818_v30 = vpop.f32.mrf.mxu1  ;;  %v645_v59 = vadd.f32 %v1976_v53, %v644_v11 }
 0x161   :  { %v1012_v31 = vadd.f32 %v1011_v29, %v1010_v26  ;;  %v814_v39 = vadd.f32 %v813_v2, %v645_v59 }
 0x163   :  { %v1013_v33 = vrot.slane %v1012_v31, 2  ;;  %v937_v9 = vmax.f32 %v814_v39, 0.0 }
 0x165   :  { %v1014_v34 = vadd.f32 %v1013_v33, %v1012_v31  ;;  %v724_v36 = vpop.f32.mrf.mxu3 }
 0x166   :  { %v646_v62 = vpop.f32.mrf.mxu0  ;;  %v903_v56 = vpop.f32.mrf.mxu2  ;;  %v725_v10 = vadd.f32 %v1976_v53, %v724_v36 }
 0x167   :  { %v1015_v4 = vrot.slane %v1014_v34, 1  ;;  %v820_v58 = vpop.f32.mrf.mxu1  ;;  %v647_v40 = vadd.f32 %v1976_v53, %v646_v62 }
 0x169   :  { %v1016_v38 = vadd.f32 %v1015_v4, %v1014_v34  ;;  %v816_v3 = vadd.f32 %v815_v16, %v647_v40  ;;  %v894_v16 = vadd.f32 %v893_v18, %v725_v10  ;;  %v1658_v18 = vld [vmem:[%s2361_s3] sm:$0xff] }
 0x16a   :  { %1188 = vmatpush.bf16.msrb.mxu2 %v1658_v18 }
 0x16b   :  { %v2313_v42 = vsel %vm1092_vm2, %v1016_v38, %v2284_v32  ;;  %v938_v15 = vmax.f32 %v816_v3, 0.0  ;;  %v969_v4 = vmax.f32 %v894_v16, 0.0  ;;  %v947_v16 = vmax.f32 %v2051_v43, 0.0 }
 0x16c   :  { %v949_v43 = vmax.f32 %v2091_v14, 0.0 }
 0x16d   :  { %v726_v24 = vpop.f32.mrf.mxu3  ;;  %v1017_v34 = vadd.f32 %v938_v15, %v937_v9 }
 0x16e   :  { %v649_v45 = vpop.f32.mrf.mxu0  ;;  %v905_v0 = vpop.f32.mrf.mxu2  ;;  %v727_v12 = vadd.f32 %v1976_v53, %v726_v24 }
 0x16f   :  { %v823_v47 = vpop.f32.mrf.mxu1  ;;  %v650_v32 = vadd.f32 %v1976_v53, %v649_v45 }
 0x170   :  { %v896_v26 = vadd.f32 %v895_v6, %v727_v12 }
 0x171   :  { %v819_v46 = vadd.f32 %v818_v30, %v650_v32  ;;  %v722_v30 = vadd.f32 %v1976_v53, %v721_v28  ;;  %v665_v28 = vadd.f32 %v1976_v53, %v2007_v7 }
 0x172   :  { %v970_v6 = vmax.f32 %v896_v26, 0.0 }
 0x173   :  { %v939_v11 = vmax.f32 %v819_v46, 0.0 }
 0x174   :  { %v1069_v3 = vadd.f32 %v970_v6, %v969_v4 }
 0x175   :  { %v729_v50 = vpop.f32.mrf.mxu3  ;;  %v1018_v38 = vadd.f32 %v1017_v34, %v939_v11  ;;  %v1682_v34 = vld [vmem:[%s2360_s2] ss:$0 sm:$0xff] }
 0x176   :  { %v651_v51 = vpop.f32.mrf.mxu0  ;;  %v730_v41 = vadd.f32 %v1976_v53, %v729_v50 }
 0x177   :  { %v825_v52 = vpop.f32.mrf.mxu1  ;;  %v652_v5 = vadd.f32 %v1976_v53, %v651_v51  ;;  %v891_v51 = vadd.f32 %v2298_v57, %v722_v30 }
 0x178   :  { %v899_v36 = vadd.f32 %v898_v27, %v730_v41 }
 0x179   :  { %v821_v60 = vadd.f32 %v820_v58, %v652_v5  ;;  %v968_v46 = vmax.f32 %v891_v51, 0.0 }
 0x17b   :  { %v940_v37 = vmax.f32 %v821_v60, 0.0 }
 0x17d   :  { %v731_v54 = vpop.f32.mrf.mxu3 }
 0x17e   :  { %v654_v25 = vpop.f32.mrf.mxu0  ;;  %v732_v33 = vadd.f32 %v1976_v53, %v731_v54  ;;  %v1019_v54 = vadd.f32 %v1018_v38, %v940_v37 }
 0x17f   :  { %v828_v55 = vpop.f32.mrf.mxu1  ;;  %v655_v13 = vadd.f32 %v1976_v53, %v654_v25 }
 0x180   :  { %v901_v50 = vadd.f32 %v900_v17, %v732_v33 }
 0x181   :  { %v824_v2 = vadd.f32 %v823_v47, %v655_v13  ;;  %v908_v47 = vpop.f32.mrf.mxu2 }
 0x182   :  { %v972_v10 = vmax.f32 %v901_v50, 0.0 }
 0x183   :  { %v941_v24 = vmax.f32 %v824_v2, 0.0 }
 0x185   :  { %v734_v48 = vpop.f32.mrf.mxu3  ;;  %v1020_v7 = vadd.f32 %v1019_v54, %v941_v24 }
 0x186   :  { %v656_v61 = vpop.f32.mrf.mxu0  ;;  %v735_v58 = vadd.f32 %v1976_v53, %v734_v48  ;;  %v667_v48 = vadd.f32 %v1976_v53, %v2030_v22 }
 0x187   :  { %v830_v1 = vpop.f32.mrf.mxu1  ;;  %v657_v19 = vadd.f32 %v1976_v53, %v656_v61 }
 0x188   :  { %v904_v59 = vadd.f32 %v903_v56, %v735_v58 }
 0x189   :  { %v826_v62 = vadd.f32 %v825_v52, %v657_v19  ;;  %v971_v52 = vmax.f32 %v899_v36, 0.0 }
 0x18a   :  { %v973_v60 = vmax.f32 %v904_v59, 0.0 }
 0x18b   :  { %v942_v25 = vmax.f32 %v826_v62, 0.0  ;;  %v1070_v13 = vadd.f32 %v1069_v3, %v971_v52  ;;  %v952_v52 = vmax.f32 %v2161_v8, 0.0 }
 0x18d   :  { %v736_v20 = vpop.f32.mrf.mxu3  ;;  %v1021_v15 = vadd.f32 %v1020_v7, %v942_v25 }
 0x18e   :  { %v659_v21 = vpop.f32.mrf.mxu0  ;;  %v737_v27 = vadd.f32 %v1976_v53, %v736_v20 }
 0x18f   :  { %v660_v29 = vadd.f32 %v1976_v53, %v659_v21  ;;  %v833_v31 = vpop.f32.mrf.mxu1  ;;  %v1071_v21 = vadd.f32 %v1070_v13, %v972_v10 }
 0x190   :  { %v834_v61 = vadd.f32 %v833_v31, %v665_v28  ;;  %v906_v57 = vadd.f32 %v905_v0, %v737_v27  ;;  %v1062_v0 = vadd.f32 %v2307_v23, %v968_v46  ;;  %v910_v31 = vpop.f32.mrf.mxu2  ;;  %v1050_v23 = vrot.slane %v2279_v44, 4 }
 0x191   :  { %v829_v45 = vadd.f32 %v828_v55, %v660_v29  ;;  %v1072_v30 = vadd.f32 %v1071_v21, %v973_v60  ;;  %v951_v28 = vmax.f32 %v2134_v49, 0.0  ;;  %v1679_v21 = vld [vmem:[%s2362_s4] ss:$0 sm:$0xff] }
 0x192   :  { %v945_v22 = vmax.f32 %v834_v61, 0.0  ;;  %v974_v26 = vmax.f32 %v906_v57, 0.0  ;;  %v1063_v6 = vrot.slane %v1062_v0, 4  ;;  %v1051_v51 = vadd.f32 %v1050_v23, %v2279_v44 }
 0x193   :  { %v943_v17 = vmax.f32 %v829_v45, 0.0 }
 0x194   :  { %v1073_v62 = vadd.f32 %v1072_v30, %v974_v26  ;;  %v1064_v54 = vadd.f32 %v1063_v6, %v1062_v0  ;;  %v1052_v61 = vrot.slane %v1051_v51, 2 }
 0x195   :  { %v739_v40 = vpop.f32.mrf.mxu3  ;;  %v1022_v20 = vadd.f32 %v1021_v15, %v943_v17 }
 0x196   :  { %v740_v55 = vadd.f32 %v1976_v53, %v739_v40  ;;  %v661_v32 = vpop.f32.mrf.mxu0 }
 0x197   :  { %v662_v5 = vadd.f32 %v1976_v53, %v661_v32  ;;  %v835_v39 = vpop.f32.mrf.mxu1  ;;  %v948_v53 = vmax.f32 %v2076_v63, 0.0  ;;  %v950_v63 = vmax.f32 %v2119_v35, 0.0  ;;  %v1065_v32 = vrot.slane %v1064_v54, 2 }
 0x198   :  { %v836_v12 = vadd.f32 %v835_v39, %v667_v48  ;;  %v909_v56 = vadd.f32 %v908_v47, %v740_v55 }
 0x199   :  { %v831_v41 = vadd.f32 %v830_v1, %v662_v5  ;;  %v1053_v5 = vadd.f32 %v1052_v61, %v1051_v51  ;;  %v1066_v44 = vadd.f32 %v1065_v32, %v1064_v54 }
 0x19a   :  { %v946_v19 = vmax.f32 %v836_v12, 0.0  ;;  %v975_v1 = vmax.f32 %v909_v56, 0.0 }
 0x19b   :  { %v944_v9 = vmax.f32 %v831_v41, 0.0  ;;  %v1054_v57 = vrot.slane %v1053_v5, 1  ;;  %v1067_v12 = vrot.slane %v1066_v44, 1 }
 0x19c   :  { %v1030_v11 = vadd.f32 %v946_v19, %v945_v22  ;;  %v1074_v38 = vadd.f32 %v1073_v62, %v975_v1 }
 0x19d   :  { %v1023_v2 = vadd.f32 %v1022_v20, %v944_v9  ;;  %v741_v29 = vpop.f32.mrf.mxu3  ;;  %v1055_v41 = vadd.f32 %v1054_v57, %v1053_v5  ;;  %v1068_v60 = vadd.f32 %v1067_v12, %v1066_v44 }
 0x19e   :  { %v1031_v33 = vadd.f32 %v1030_v11, %v947_v16  ;;  %v742_v36 = vadd.f32 %v1682_v34, %v741_v29 }
 0x19f   :  { %v1024_v37 = vrot.slane %v1023_v2, 4 }
 0x1a0   :  { %v1032_v4 = vadd.f32 %v1031_v33, %v948_v53  ;;  %v911_v58 = vadd.f32 %v910_v31, %v742_v36 }
 0x1a1   :  { %v1025_v18 = vadd.f32 %v1024_v37, %v1023_v2 }
 0x1a2   :  { %v1033_v24 = vadd.f32 %v1032_v4, %v949_v43  ;;  %v976_v45 = vmax.f32 %v911_v58, 0.0 }
 0x1a3   :  { %v1026_v47 = vrot.slane %v1025_v18, 2 }
 0x1a4   :  { %v1034_v50 = vadd.f32 %v1033_v24, %v950_v63  ;;  %v1075_v27 = vadd.f32 %v1074_v38, %v976_v45 }
 0x1a5   :  { %v1027_v14 = vadd.f32 %v1026_v47, %v1025_v18 }
 0x1a6   :  { %v1035_v25 = vadd.f32 %v1034_v50, %v951_v28  ;;  %v1076_v35 = vrot.slane %v1075_v27, 4 }
 0x1a7   :  { %v1028_v40 = vrot.slane %v1027_v14, 1 }
 0x1a8   :  { %v1036_v48 = vadd.f32 %v1035_v25, %v952_v52  ;;  %v1077_v59 = vadd.f32 %v1076_v35, %v1075_v27 }
 0x1a9   :  { %v1029_v55 = vadd.f32 %v1028_v40, %v1027_v14 }
 0x1aa   :  { %v1037_v3 = vrot.slane %v1036_v48, 4  ;;  %v1078_v7 = vrot.slane %v1077_v59, 2 }
 0x1ab   :  { %v1095_v49 = vsel %vm1094_vm3, %v1029_v55, %v2313_v42 }
 0x1ac   :  { %v1038_v17 = vadd.f32 %v1037_v3, %v1036_v48  ;;  %v1079_v10 = vadd.f32 %v1078_v7, %v1077_v59 }
 0x1ae   :  { %v1039_v39 = vrot.slane %v1038_v17, 2  ;;  %v1080_v13 = vrot.slane %v1079_v10, 1 }
 0x1b0   :  { %v1040_v8 = vadd.f32 %v1039_v39, %v1038_v17  ;;  %v1081_v42 = vadd.f32 %v1080_v13, %v1079_v10 }
 0x1b2   :  { %v1041_v46 = vrot.slane %v1040_v8, 1 }
 0x1b4   :  { %v1042_v15 = vadd.f32 %v1041_v46, %v1040_v8 }
 0x1b6   :  { %v1097_v22 = vsel %vm1096_vm4, %v1042_v15, %v1095_v49 }
 0x1b7   :  { %v1099_v56 = vsel %vm1098_vm5, %v1055_v41, %v1097_v22 }
 0x1b8   :  { %v1101_v19 = vsel %vm1100_vm6, %v1068_v60, %v1099_v56 }
 0x1b9   :  { %v1103_v20 = vsel %vm1102_vm7, %v1081_v42, %v1101_v19 }
 0x1ba   :  { %v1111_v9 = vmul.f32 0.015625, %v1103_v20 }
 0x1bc   :  { %v1112_v16 = vpack.c.bf16 %v1111_v9, %v1111_v9 }
 0x1be   :  { %1189 = vmatmul.bf16.vlgmr.msrb.gmra.mxu2 %v1112_v16 }
 0x241   :  { %v1190_v26 = vpop.f32.mrf.mxu2 }
 0x242   :  { %v1191_v11 = vadd.f32 %v1679_v21, %v1190_v26 }
 0x244   :  { %v1194_v53 = vmul.f32 %v1191_v11, %v1191_v11 }
 0x246   :  { %1195 = vadd.xlane.f32.xlu0 %v1194_v53 }
 0x249   :  { %v1192_v0 = vpop.f32.mrf.mxu2 }
 0x2b9   :  { %v1196_v2 = vpop.xlane.xlu0 %1195 }
 0x2ba   :  { %v1197_v29 = vadd.f32 1e-12, %v1196_v2 }
 0x2bc   :  { %1680 = vrsqrt.f32 %v1197_v29  ;;  %vm1204_vm9 = vweird.f32 %v1197_v29 }
 0x2c2   :  { %v1681_v31 = vpop.eup %1680 }
 0x2c3   :  { %v1199_v30 = vmul.f32 %v1681_v31, %v1197_v29  ;;  %vm1205_vm8 = vweird.f32 %v1681_v31 }
 0x2c4   :  { %vm1206_vm10 = vmor %vm1204_vm9, %vm1205_vm8 }
 0x2c5   :  { %v1200_v1 = vmul.f32 %v1681_v31, %v1199_v30 }
 0x2c7   :  { %v1201_v33 = vmul.f32 0.5, %v1200_v1 }
 0x2c9   :  { %v1202_v34 = vsub.f32 1.5, %v1201_v33 }
 0x2cb   :  { %v1203_v36 = vmul.f32 %v1681_v31, %v1202_v34 }
 0x2cd   :  { %v1207_v37 = vsel %vm1206_vm10, %v1681_v31, %v1203_v36 }
 0x2ce   :  { %v1208_v43 = vmul.f32 %v1207_v37, %v1191_v11 }
 0x2d0   :  { %1209 = vst [vmem:[%s2363_s5] sm:$0xff] %v1208_v43 }

</bundles_post_ra>
